<compile_context>
chip_gen: v6e
topology: v6e:2x2x1
jax: 0.10.0
libtpu: 0.0.40
codegen_flags: <defaults>
</compile_context>

<pallas_src>
import functools

import jax
import jax.numpy as jnp
from jax.experimental import pallas as pl
from jax.experimental.pallas import tpu as pltpu


C_PAD = 128          # channel padding (45 -> 128) for lane-dense operands
N_LAYERS = 6
EPS = 1e-5


# --------------------------------------------------------------------------
# Fused kernel body (one grid step per residual layer).
# --------------------------------------------------------------------------
def _res8_kernel(p0_ref, w0_ref, pool_ref, mask_ref, wl_ref,
                 head_ref, wout_ref, bout_ref, o_ref,
                 xbuf_ref, old_ref, *, nr, halo, offs):
    g = pl.program_id(0)
    inv_nr = 1.0 / nr

    # ---- step 0: conv0 + ReLU + AvgPool2d((4,3)); park x0 in the haloed buffer
    @pl.when(g == 0)
    def _():
        xbuf_ref[...] = jnp.zeros_like(xbuf_ref)          # halo rows must be 0
        y0 = jnp.maximum(
            jnp.dot(p0_ref[...], w0_ref[...],
                    preferred_element_type=jnp.float32), 0.0)      # (R0, 128)
        x0 = jnp.dot(pool_ref[...], y0,
                     preferred_element_type=jnp.float32)           # (NR, 128)
        xbuf_ref[pl.ds(halo, nr), :] = x0
        old_ref[...] = x0                                          # old_x

    # ---- residual layer g+1: 9 haloed windows -> ONE K=9*128 bf16 matmul
    xfull = xbuf_ref[...]                                  # (halo+NR+halo, 128)
    parts = []
    for t, off in enumerate(offs):                         # static 9-tap unroll
        win = xfull[halo + off: halo + off + nr, :]        # static row window
        if t == 4:                                         # centre tap: mask==1
            parts.append(win.astype(jnp.bfloat16))
        else:
            parts.append((win * mask_ref[t]).astype(jnp.bfloat16))
    xcat = jnp.concatenate(parts, axis=1)                  # (NR, 9*128) bf16
    y = jnp.maximum(
        jnp.dot(xcat, wl_ref[0], preferred_element_type=jnp.float32), 0.0)

    # even layers (2,4,6 -> g odd): x = y + old_x ; old_x = x  (pre-BN sum)
    res_gate = (g % 2).astype(jnp.float32)
    v = y + res_gate * old_ref[...]

    @pl.when(g % 2 == 1)
    def _():
        old_ref[...] = v

    # BatchNorm2d(affine=False), training-mode batch stats, single traversal.
    s1 = jnp.sum(v, axis=0, keepdims=True)
    s2 = jnp.sum(v * v, axis=0, keepdims=True)
    mean = s1 * inv_nr
    var = s2 * inv_nr - mean * mean
    xn = (v - mean) * jax.lax.rsqrt(var + EPS)
    xbuf_ref[pl.ds(halo, nr), :] = xn

    # ---- last step: global spatial mean + Linear head (lane-dense store)
    @pl.when(g == pl.num_programs(0) - 1)
    def _():
        feat = jnp.dot(head_ref[...], xn,
                       preferred_element_type=jnp.float32)          # (N, 128)
        o_ref[...] = (jnp.dot(feat, wout_ref[...],
                              preferred_element_type=jnp.float32)
                      + bout_ref[...])


# --------------------------------------------------------------------------
# One-time parameter prep: channel padding to 128 lanes, per-layer K-stacked
# bf16 weights, pooling / tap-mask / spatial-mean constants.
# --------------------------------------------------------------------------
def prepare_kernel_params(params, batch, height, width):
    assert height % 4 == 0 and width % 3 == 0, (
        "AvgPool2d((4,3)) requires H % 4 == 0 and W % 3 == 0")
    ho, wo = height // 4, width // 3
    nr, r0 = batch * ho * wo, batch * height * width
    c_real = params["conv0"].shape[2]
    ncls = params["w_out"].shape[1]
    f32 = jnp.float32

    # conv0 weights (9,1,45) -> (128,128): taps on rows 0..8, channels 0..44.
    w0 = jnp.zeros((C_PAD, C_PAD), f32).at[:9, :c_real].set(params["conv0"][:, 0, :])

    # residual-layer weights: per layer, 9 padded (128,128) taps stacked along K
    # -> (6, 9*128, 128), bf16 MXU operands (f32 accumulation in-kernel).
    wl = jnp.zeros((N_LAYERS, 9, C_PAD, C_PAD), f32)
    for i in range(1, N_LAYERS + 1):
        wl = wl.at[i - 1, :, :c_real, :c_real].set(params[f"conv{i}"])
    wl = wl.reshape(N_LAYERS, 9 * C_PAD, C_PAD).astype(jnp.bfloat16)

    # linear head (45,K) -> (128,128); bias (1,K) -> (1,128)  (lane-dense store)
    w_out = jnp.zeros((C_PAD, C_PAD), f32).at[:c_real, :ncls].set(params["w_out"])
    b_out = jnp.zeros((1, C_PAD), f32).at[:, :ncls].set(params["b_out"])

    # Row/col index helpers (pooled row index r = n*Ho*Wo + h*Wo + w).
    r = jnp.arange(nr)
    rn, rh, rw = r // (ho * wo), (r // wo) % ho, r % wo
    q = jnp.arange(r0)
    qn, qh, qw = q // (height * width), (q // width) % height, q % width

    # AvgPool2d((4,3)) as a (NR, N*H*W) matrix with entries 0 or 1/12.
    pool = ((rn[:, None] == qn[None, :]) &
            (rh[:, None] == qh[None, :] // 4) &
            (rw[:, None] == qw[None, :] // 3)).astype(f32) / 12.0

    # Per-tap validity masks (zero-padded 3x3 conv) broadcast over 128 lanes.
    masks = []
    for dy in range(3):
        for dx in range(3):
            hs, ws = rh + dy - 1, rw + dx - 1
            valid = ((hs >= 0) & (hs < ho) & (ws >= 0) & (ws < wo)).astype(f32)
            masks.append(jnp.broadcast_to(valid[:, None], (nr, C_PAD)))
    mask = jnp.stack(masks)                                  # (9, NR, 128)

    # Global spatial mean as a (N, NR) matrix with entries 1/(Ho*Wo).
    head = ((jnp.arange(batch)[:, None] == rn[None, :]).astype(f32)
            / float(ho * wo))

    return {"w0": w0, "wl": wl, "w_out": w_out, "b_out": b_out,
            "pool": pool, "mask": mask, "head": head}


# --------------------------------------------------------------------------
# Forward pass: tiny wrapper-side im2col of the input, then ONE pallas_call.
# --------------------------------------------------------------------------
@functools.partial(jax.jit, static_argnames=("num_classes",))
def res8_forward(x_nchw, kp, *, num_classes):
    N, cin, H, W = x_nchw.shape
    assert cin == 1, "res8 expects a single input channel"
    assert H % 4 == 0 and W % 3 == 0, (
        "AvgPool2d((4,3)) requires H % 4 == 0 and W % 3 == 0")
    ho, wo = H // 4, W // 3
    nr, r0 = N * ho * wo, N * H * W
    offs = tuple((dy - 1) * wo + (dx - 1) for dy in range(3) for dx in range(3))
    halo = ((wo + 1 + 7) // 8) * 8         # zero halo rows around the activation

    # conv0 im2col patches, lane-dense: (N*H*W, 128) with the 9 taps in cols 0..8.
    x = x_nchw.reshape(N, H, W).astype(jnp.float32)
    xp = jnp.pad(x, ((0, 0), (1, 1), (1, 1)))
    p0 = jnp.stack([xp[:, dy:dy + H, dx:dx + W]
                    for dy in range(3) for dx in range(3)],
                   axis=-1).reshape(r0, 9)
    p0 = jnp.pad(p0, ((0, 0), (0, C_PAD - 9)))

    kernel = functools.partial(_res8_kernel, nr=nr, halo=halo, offs=offs)
    out = pl.pallas_call(
        kernel,
        out_shape=jax.ShapeDtypeStruct((N, C_PAD), jnp.float32),
        grid_spec=pltpu.PrefetchScalarGridSpec(
            num_scalar_prefetch=0,
            grid=(N_LAYERS,),
            in_specs=[
                pl.BlockSpec((r0, C_PAD), lambda g: (0, 0)),        # p0 (const)
                pl.BlockSpec((C_PAD, C_PAD), lambda g: (0, 0)),     # conv0 W
                pl.BlockSpec((nr, r0), lambda g: (0, 0)),           # pool matrix
                pl.BlockSpec((9, nr, C_PAD), lambda g: (0, 0, 0)),  # tap masks
                pl.BlockSpec((1, 9 * C_PAD, C_PAD),
                             lambda g: (g, 0, 0)),                  # layer g+1 W
                pl.BlockSpec((N, nr), lambda g: (0, 0)),            # spatial mean
                pl.BlockSpec((C_PAD, C_PAD), lambda g: (0, 0)),     # linear W
                pl.BlockSpec((1, C_PAD), lambda g: (0, 0)),         # linear b
            ],
            out_specs=pl.BlockSpec((N, C_PAD), lambda g: (0, 0)),
            scratch_shapes=[
                pltpu.VMEM((nr + 2 * halo, C_PAD), jnp.float32),    # haloed x
                pltpu.VMEM((nr, C_PAD), jnp.float32),               # old_x
            ]),
        compiler_params=pltpu.CompilerParams(
            dimension_semantics=("arbitrary",)),
    )(p0, kp["w0"], kp["pool"], kp["mask"], kp["wl"],
      kp["head"], kp["w_out"], kp["b_out"])
    return out[:, :num_classes]


# --------------------------------------------------------------------------
# Pure-JAX references (exact f32 module semantics, and a mixed-precision
# variant that emulates the kernel's bf16 residual-layer matmuls).
# --------------------------------------------------------------------------
def res8_reference(x_nchw, params, bf16_layer_matmuls=False):
    x = jnp.transpose(x_nchw, (0, 2, 3, 1)).astype(jnp.float32)

    def conv(x, w, bf16):
        w4 = w.reshape(3, 3, w.shape[1], w.shape[2])
        if bf16:
            x, w4 = x.astype(jnp.bfloat16), w4.astype(jnp.bfloat16)
        return jax.lax.conv_general_dilated(
            x, w4, (1, 1), ((1, 1), (1, 1)),
            dimension_numbers=("NHWC", "HWIO", "NHWC"),
            preferred_element_type=jnp.float32,
            precision=jax.lax.Precision.HIGHEST)

    def bn(x):
        m = x.mean(axis=(0, 1, 2), keepdims=True)
        v = ((x - m) ** 2).mean(axis=(0, 1, 2), keepdims=True)
        return (x - m) / jnp.sqrt(v + 1e-5)

    y = jax.nn.relu(conv(x, params["conv0"], False))
    n, h, w, c = y.shape
    y = y.reshape(n, h // 4, 4, w // 3, 3, c).mean(axis=(2, 4))
    x, old = y, y
    for i in range(1, N_LAYERS + 1):
        y = jax.nn.relu(conv(x, params[f"conv{i}"], bf16_layer_matmuls))
        if i % 2 == 0:
            s = y + old
            old = s
            x = bn(s)
        else:
            x = bn(y)
    feat = x.mean(axis=(1, 2))
    return jnp.dot(feat, params["w_out"],
                   precision=jax.lax.Precision.HIGHEST) + params["b_out"]


def init_params(key, num_classes):
    ks = jax.random.split(key, 9)
    params = {"conv0": 0.3 * jax.random.normal(ks[0], (9, 1, 45), jnp.float32)}
    for i in range(1, N_LAYERS + 1):
        params[f"conv{i}"] = 0.1 * jax.random.normal(ks[i], (9, 45, 45), jnp.float32)
    params["w_out"] = 0.1 * jax.random.normal(ks[7], (45, num_classes), jnp.float32)
    params["b_out"] = 0.01 * jax.random.normal(ks[8], (1, num_classes), jnp.float32)
    return params


if __name__ == "__main__":
    num_classes = 12
    # N=2, 1 input channel, H=16 (multiple of 4), W=12 (multiple of 3) so
    # AvgPool2d((4,3)) is exact; NCHW layout like the PyTorch module.
    N, H, W = 2, 16, 12
    key = jax.random.PRNGKey(0)
    k_x, k_p = jax.random.split(key)
    x = jax.random.normal(k_x, (N, 1, H, W), jnp.float32)
    params = init_params(k_p, num_classes)
    kparams = prepare_kernel_params(params, N, H, W)     # one-time prep

    out = res8_forward(x, kparams, num_classes=num_classes)
    out = jax.block_until_ready(out)
    assert out.shape == (N, num_classes)

    # Tight check vs. a reference that emulates the kernel's bf16 layer matmuls.
    ref_mixed = res8_reference(x, params, bf16_layer_matmuls=True)
    err_mixed = jnp.max(jnp.abs(out - ref_mixed))
    assert jnp.allclose(out, ref_mixed, atol=3e-3, rtol=3e-3), (
        f"kernel vs mixed-precision reference: max abs err {err_mixed}")

    # Loose check vs. exact f32 module semantics (bf16 MXU operands in the six
    # residual-layer matmuls introduce ~1e-3..1e-2 level deviations).
    ref_f32 = res8_reference(x, params, bf16_layer_matmuls=False)
    err_f32 = jnp.max(jnp.abs(out - ref_f32))
    assert jnp.allclose(out, ref_f32, atol=3e-2, rtol=3e-2), (
        f"kernel vs f32 reference: max abs err {err_f32}")

    print("KERNEL_OK")
</pallas_src>

<mosaic_0001>
module attributes {stable_mosaic.version = 11 : i64} {
  func.func @_res8_kernel(%arg0: i32, %arg1: memref<384x128xf32, #tpu.memory_space<vmem>>, %arg2: memref<128x128xf32, #tpu.memory_space<vmem>>, %arg3: memref<32x384xf32, #tpu.memory_space<vmem>>, %arg4: memref<9x32x128xf32, #tpu.memory_space<vmem>>, %arg5: memref<1x1152x128xbf16, #tpu.memory_space<vmem>>, %arg6: memref<2x32xf32, #tpu.memory_space<vmem>>, %arg7: memref<128x128xf32, #tpu.memory_space<vmem>>, %arg8: memref<1x128xf32, #tpu.memory_space<vmem>>, %arg9: memref<2x128xf32, #tpu.memory_space<vmem>>, %arg10: memref<48x128xf32, #tpu.memory_space<vmem>>, %arg11: memref<32x128xf32, #tpu.memory_space<vmem>>) attributes {dimension_semantics = [#tpu.dimension_semantics<arbitrary>], iteration_bounds = array<i64: 6>, scalar_prefetch = 0 : i64, scratch_operands = 2 : i64, tpu.core_type = #tpu.core_type<tc>, window_params = [{pipeline_mode = #tpu.pipeline_mode<synchronous>, transform_indices = @transform_0, window_bounds = array<i64: 384, 128>}, {pipeline_mode = #tpu.pipeline_mode<synchronous>, transform_indices = @transform_1, window_bounds = array<i64: 128, 128>}, {pipeline_mode = #tpu.pipeline_mode<synchronous>, transform_indices = @transform_2, window_bounds = array<i64: 32, 384>}, {pipeline_mode = #tpu.pipeline_mode<synchronous>, transform_indices = @transform_3, window_bounds = array<i64: 9, 32, 128>}, {transform_indices = @transform_4, window_bounds = array<i64: 1, 1152, 128>}, {pipeline_mode = #tpu.pipeline_mode<synchronous>, transform_indices = @transform_5, window_bounds = array<i64: 2, 32>}, {pipeline_mode = #tpu.pipeline_mode<synchronous>, transform_indices = @transform_6, window_bounds = array<i64: 128, 128>}, {pipeline_mode = #tpu.pipeline_mode<synchronous>, transform_indices = @transform_7, window_bounds = array<i64: 1, 128>}, {pipeline_mode = #tpu.pipeline_mode<synchronous>, transform_indices = @transform_8, window_bounds = array<i64: 2, 128>}]} {
    %c0_i32 = arith.constant 0 : i32
    %0 = arith.cmpi eq, %arg0, %c0_i32 : i32
    %1 = arith.extui %0 : i1 to i32
    %c0_i32_0 = arith.constant 0 : i32
    %2 = arith.cmpi ne, %1, %c0_i32_0 : i32
    scf.if %2 {
      %cst_45 = arith.constant 0.000000e+00 : f32
      %102 = vector.broadcast %cst_45 : f32 to vector<48x128xf32>
      %c0_46 = arith.constant 0 : index
      %c0_47 = arith.constant 0 : index
      %103 = vector.load %arg10[%c0_46, %c0_47] : memref<48x128xf32, #tpu.memory_space<vmem>>, vector<48x128xf32>
      tpu.vector_store %arg10[%c0_46, %c0_47], %102 {strides = array<i32>} : memref<48x128xf32, #tpu.memory_space<vmem>>, vector<48x128xf32>,
      %c0_48 = arith.constant 0 : index
      %c0_49 = arith.constant 0 : index
      %104 = vector.load %arg1[%c0_48, %c0_49] : memref<384x128xf32, #tpu.memory_space<vmem>>, vector<384x128xf32>
      %c0_50 = arith.constant 0 : index
      %c0_51 = arith.constant 0 : index
      %105 = vector.load %arg2[%c0_50, %c0_51] : memref<128x128xf32, #tpu.memory_space<vmem>>, vector<128x128xf32>
      %cst_52 = arith.constant dense<0.000000e+00> : vector<384x128xf32>
      %106 = tpu.matmul %104, %105, %cst_52 {dimension_numbers = #tpu.dot_dimension_numbers<[1], [0], [0], [1], [0, 0, 1, 1], [], []>} : vector<384x128xf32>, vector<128x128xf32>, vector<384x128xf32> -> vector<384x128xf32>
      %cst_53 = arith.constant 0.000000e+00 : f32
      %107 = vector.broadcast %cst_53 : f32 to vector<384x128xf32>
      %108 = arith.maximumf %106, %107 : vector<384x128xf32>
      %c0_54 = arith.constant 0 : index
      %c0_55 = arith.constant 0 : index
      %109 = vector.load %arg3[%c0_54, %c0_55] : memref<32x384xf32, #tpu.memory_space<vmem>>, vector<32x384xf32>
      %cst_56 = arith.constant dense<0.000000e+00> : vector<32x128xf32>
      %110 = tpu.matmul %109, %108, %cst_56 {dimension_numbers = #tpu.dot_dimension_numbers<[1], [0], [0], [1], [0, 0, 1, 1], [], []>} : vector<32x384xf32>, vector<384x128xf32>, vector<32x128xf32> -> vector<32x128xf32>
      %c8_57 = arith.constant 8 : index
      %c0_58 = arith.constant 0 : index
      %111 = vector.load %arg10[%c8_57, %c0_58] : memref<48x128xf32, #tpu.memory_space<vmem>>, vector<32x128xf32>
      tpu.vector_store %arg10[%c8_57, %c0_58], %110 {strides = array<i32>} : memref<48x128xf32, #tpu.memory_space<vmem>>, vector<32x128xf32>,
      %c0_59 = arith.constant 0 : index
      %c0_60 = arith.constant 0 : index
      %112 = vector.load %arg11[%c0_59, %c0_60] : memref<32x128xf32, #tpu.memory_space<vmem>>, vector<32x128xf32>
      tpu.vector_store %arg11[%c0_59, %c0_60], %110 {strides = array<i32>} : memref<32x128xf32, #tpu.memory_space<vmem>>, vector<32x128xf32>,
    } else {
    }
    %c0 = arith.constant 0 : index
    %c0_1 = arith.constant 0 : index
    %3 = vector.load %arg10[%c0, %c0_1] : memref<48x128xf32, #tpu.memory_space<vmem>>, vector<48x128xf32>
    %4 = vector.extract_strided_slice %3 {offsets = [3, 0], sizes = [32, 128], strides = [1, 1]} : vector<48x128xf32> to vector<32x128xf32>
    %c0_2 = arith.constant 0 : index
    %c0_3 = arith.constant 0 : index
    %c0_4 = arith.constant 0 : index
    %5 = vector.load %arg4[%c0_2, %c0_3, %c0_4] : memref<9x32x128xf32, #tpu.memory_space<vmem>>, vector<1x32x128xf32>
    %6 = vector.shape_cast %5 : vector<1x32x128xf32> to vector<32x128xf32>
    %7 = arith.mulf %4, %6 : vector<32x128xf32>
    %8 = arith.truncf %7 : vector<32x128xf32> to vector<32x128xbf16>
    %9 = vector.extract_strided_slice %3 {offsets = [4, 0], sizes = [32, 128], strides = [1, 1]} : vector<48x128xf32> to vector<32x128xf32>
    %c1 = arith.constant 1 : index
    %c0_5 = arith.constant 0 : index
    %c0_6 = arith.constant 0 : index
    %10 = vector.load %arg4[%c1, %c0_5, %c0_6] : memref<9x32x128xf32, #tpu.memory_space<vmem>>, vector<1x32x128xf32>
    %11 = vector.shape_cast %10 : vector<1x32x128xf32> to vector<32x128xf32>
    %12 = arith.mulf %9, %11 : vector<32x128xf32>
    %13 = arith.truncf %12 : vector<32x128xf32> to vector<32x128xbf16>
    %14 = vector.extract_strided_slice %3 {offsets = [5, 0], sizes = [32, 128], strides = [1, 1]} : vector<48x128xf32> to vector<32x128xf32>
    %c2 = arith.constant 2 : index
    %c0_7 = arith.constant 0 : index
    %c0_8 = arith.constant 0 : index
    %15 = vector.load %arg4[%c2, %c0_7, %c0_8] : memref<9x32x128xf32, #tpu.memory_space<vmem>>, vector<1x32x128xf32>
    %16 = vector.shape_cast %15 : vector<1x32x128xf32> to vector<32x128xf32>
    %17 = arith.mulf %14, %16 : vector<32x128xf32>
    %18 = arith.truncf %17 : vector<32x128xf32> to vector<32x128xbf16>
    %19 = vector.extract_strided_slice %3 {offsets = [7, 0], sizes = [32, 128], strides = [1, 1]} : vector<48x128xf32> to vector<32x128xf32>
    %c3 = arith.constant 3 : index
    %c0_9 = arith.constant 0 : index
    %c0_10 = arith.constant 0 : index
    %20 = vector.load %arg4[%c3, %c0_9, %c0_10] : memref<9x32x128xf32, #tpu.memory_space<vmem>>, vector<1x32x128xf32>
    %21 = vector.shape_cast %20 : vector<1x32x128xf32> to vector<32x128xf32>
    %22 = arith.mulf %19, %21 : vector<32x128xf32>
    %23 = arith.truncf %22 : vector<32x128xf32> to vector<32x128xbf16>
    %24 = vector.extract_strided_slice %3 {offsets = [8, 0], sizes = [32, 128], strides = [1, 1]} : vector<48x128xf32> to vector<32x128xf32>
    %25 = arith.truncf %24 : vector<32x128xf32> to vector<32x128xbf16>
    %26 = vector.extract_strided_slice %3 {offsets = [9, 0], sizes = [32, 128], strides = [1, 1]} : vector<48x128xf32> to vector<32x128xf32>
    %c5 = arith.constant 5 : index
    %c0_11 = arith.constant 0 : index
    %c0_12 = arith.constant 0 : index
    %27 = vector.load %arg4[%c5, %c0_11, %c0_12] : memref<9x32x128xf32, #tpu.memory_space<vmem>>, vector<1x32x128xf32>
    %28 = vector.shape_cast %27 : vector<1x32x128xf32> to vector<32x128xf32>
    %29 = arith.mulf %26, %28 : vector<32x128xf32>
    %30 = arith.truncf %29 : vector<32x128xf32> to vector<32x128xbf16>
    %31 = vector.extract_strided_slice %3 {offsets = [11, 0], sizes = [32, 128], strides = [1, 1]} : vector<48x128xf32> to vector<32x128xf32>
    %c6 = arith.constant 6 : index
    %c0_13 = arith.constant 0 : index
    %c0_14 = arith.constant 0 : index
    %32 = vector.load %arg4[%c6, %c0_13, %c0_14] : memref<9x32x128xf32, #tpu.memory_space<vmem>>, vector<1x32x128xf32>
    %33 = vector.shape_cast %32 : vector<1x32x128xf32> to vector<32x128xf32>
    %34 = arith.mulf %31, %33 : vector<32x128xf32>
    %35 = arith.truncf %34 : vector<32x128xf32> to vector<32x128xbf16>
    %36 = vector.extract_strided_slice %3 {offsets = [12, 0], sizes = [32, 128], strides = [1, 1]} : vector<48x128xf32> to vector<32x128xf32>
    %c7 = arith.constant 7 : index
    %c0_15 = arith.constant 0 : index
    %c0_16 = arith.constant 0 : index
    %37 = vector.load %arg4[%c7, %c0_15, %c0_16] : memref<9x32x128xf32, #tpu.memory_space<vmem>>, vector<1x32x128xf32>
    %38 = vector.shape_cast %37 : vector<1x32x128xf32> to vector<32x128xf32>
    %39 = arith.mulf %36, %38 : vector<32x128xf32>
    %40 = arith.truncf %39 : vector<32x128xf32> to vector<32x128xbf16>
    %41 = vector.extract_strided_slice %3 {offsets = [13, 0], sizes = [32, 128], strides = [1, 1]} : vector<48x128xf32> to vector<32x128xf32>
    %c8 = arith.constant 8 : index
    %c0_17 = arith.constant 0 : index
    %c0_18 = arith.constant 0 : index
    %42 = vector.load %arg4[%c8, %c0_17, %c0_18] : memref<9x32x128xf32, #tpu.memory_space<vmem>>, vector<1x32x128xf32>
    %43 = vector.shape_cast %42 : vector<1x32x128xf32> to vector<32x128xf32>
    %44 = arith.mulf %41, %43 : vector<32x128xf32>
    %45 = arith.truncf %44 : vector<32x128xf32> to vector<32x128xbf16>
    %46 = tpu.concatenate %8, %13, %18, %23, %25, %30, %35, %40, %45 in 1 : vector<32x128xbf16>, vector<32x128xbf16>, vector<32x128xbf16>, vector<32x128xbf16>, vector<32x128xbf16>, vector<32x128xbf16>, vector<32x128xbf16>, vector<32x128xbf16>, vector<32x128xbf16> -> vector<32x1152xbf16>
    %c0_19 = arith.constant 0 : index
    %c0_20 = arith.constant 0 : index
    %c0_21 = arith.constant 0 : index
    %47 = vector.load %arg5[%c0_19, %c0_20, %c0_21] : memref<1x1152x128xbf16, #tpu.memory_space<vmem>>, vector<1x1152x128xbf16>
    %48 = vector.shape_cast %47 : vector<1x1152x128xbf16> to vector<1152x128xbf16>
    %cst = arith.constant dense<0.000000e+00> : vector<32x128xf32>
    %49 = tpu.matmul %46, %48, %cst {dimension_numbers = #tpu.dot_dimension_numbers<[1], [0], [0], [1], [0, 0, 1, 1], [], []>} : vector<32x1152xbf16>, vector<1152x128xbf16>, vector<32x128xf32> -> vector<32x128xf32>
    %cst_22 = arith.constant 0.000000e+00 : f32
    %50 = vector.broadcast %cst_22 : f32 to vector<32x128xf32>
    %51 = arith.maximumf %49, %50 : vector<32x128xf32>
    %c2_i32 = arith.constant 2 : i32
    %c0_i32_23 = arith.constant 0 : i32
    %52 = arith.cmpi eq, %c2_i32, %c0_i32_23 : i32
    %c1_i32 = arith.constant 1 : i32
    %53 = arith.select %52, %c1_i32, %c2_i32 : i32
    %54 = arith.remsi %arg0, %53 : i32
    %c0_i32_24 = arith.constant 0 : i32
    %55 = arith.cmpi ne, %54, %c0_i32_24 : i32
    %c0_i32_25 = arith.constant 0 : i32
    %56 = arith.cmpi slt, %54, %c0_i32_25 : i32
    %c0_i32_26 = arith.constant 0 : i32
    %57 = arith.cmpi slt, %53, %c0_i32_26 : i32
    %58 = arith.xori %56, %57 : i1
    %59 = arith.andi %58, %55 : i1
    %60 = arith.addi %54, %53 : i32
    %61 = arith.select %59, %60, %54 : i32
    %62 = arith.sitofp %61 : i32 to f32
    %c0_27 = arith.constant 0 : index
    %c0_28 = arith.constant 0 : index
    %63 = vector.load %arg11[%c0_27, %c0_28] : memref<32x128xf32, #tpu.memory_space<vmem>>, vector<32x128xf32>
    %64 = vector.broadcast %62 : f32 to vector<32x128xf32>
    %65 = arith.mulf %64, %63 : vector<32x128xf32>
    %66 = arith.addf %51, %65 : vector<32x128xf32>
    %c2_i32_29 = arith.constant 2 : i32
    %c0_i32_30 = arith.constant 0 : i32
    %67 = arith.cmpi eq, %c2_i32_29, %c0_i32_30 : i32
    %c1_i32_31 = arith.constant 1 : i32
    %68 = arith.select %67, %c1_i32_31, %c2_i32_29 : i32
    %69 = arith.remsi %arg0, %68 : i32
    %c0_i32_32 = arith.constant 0 : i32
    %70 = arith.cmpi ne, %69, %c0_i32_32 : i32
    %c0_i32_33 = arith.constant 0 : i32
    %71 = arith.cmpi slt, %69, %c0_i32_33 : i32
    %c0_i32_34 = arith.constant 0 : i32
    %72 = arith.cmpi slt, %68, %c0_i32_34 : i32
    %73 = arith.xori %71, %72 : i1
    %74 = arith.andi %73, %70 : i1
    %75 = arith.addi %69, %68 : i32
    %76 = arith.select %74, %75, %69 : i32
    %c1_i32_35 = arith.constant 1 : i32
    %77 = arith.cmpi eq, %76, %c1_i32_35 : i32
    %78 = arith.extui %77 : i1 to i32
    %c0_i32_36 = arith.constant 0 : i32
    %79 = arith.cmpi ne, %78, %c0_i32_36 : i32
    scf.if %79 {
      %c0_45 = arith.constant 0 : index
      %c0_46 = arith.constant 0 : index
      %102 = vector.load %arg11[%c0_45, %c0_46] : memref<32x128xf32, #tpu.memory_space<vmem>>, vector<32x128xf32>
      tpu.vector_store %arg11[%c0_45, %c0_46], %66 {strides = array<i32>} : memref<32x128xf32, #tpu.memory_space<vmem>>, vector<32x128xf32>,
    } else {
    }
    %cst_37 = arith.constant dense<0.000000e+00> : vector<128xf32>
    %80 = vector.multi_reduction <add>, %66, %cst_37 [0] : vector<32x128xf32> to vector<128xf32>
    %81 = vector.shape_cast %80 : vector<128xf32> to vector<1x128xf32>
    %82 = arith.mulf %66, %66 : vector<32x128xf32>
    %cst_38 = arith.constant dense<0.000000e+00> : vector<128xf32>
    %83 = vector.multi_reduction <add>, %82, %cst_38 [0] : vector<32x128xf32> to vector<128xf32>
    %84 = vector.shape_cast %83 : vector<128xf32> to vector<1x128xf32>
    %cst_39 = arith.constant 3.125000e-02 : f32
    %85 = vector.broadcast %cst_39 : f32 to vector<1x128xf32>
    %86 = arith.mulf %81, %85 : vector<1x128xf32>
    %cst_40 = arith.constant 3.125000e-02 : f32
    %87 = vector.broadcast %cst_40 : f32 to vector<1x128xf32>
    %88 = arith.mulf %84, %87 : vector<1x128xf32>
    %89 = arith.mulf %86, %86 : vector<1x128xf32>
    %90 = arith.subf %88, %89 : vector<1x128xf32>
    %91 = vector.broadcast %86 : vector<1x128xf32> to vector<32x128xf32>
    %92 = arith.subf %66, %91 : vector<32x128xf32>
    %cst_41 = arith.constant 9.99999974E-6 : f32
    %93 = vector.broadcast %cst_41 : f32 to vector<1x128xf32>
    %94 = arith.addf %90, %93 : vector<1x128xf32>
    %95 = math.rsqrt %94 : vector<1x128xf32>
    %96 = vector.broadcast %95 : vector<1x128xf32> to vector<32x128xf32>
    %97 = arith.mulf %92, %96 : vector<32x128xf32>
    %c8_42 = arith.constant 8 : index
    %c0_43 = arith.constant 0 : index
    %98 = vector.load %arg10[%c8_42, %c0_43] : memref<48x128xf32, #tpu.memory_space<vmem>>, vector<32x128xf32>
    tpu.vector_store %arg10[%c8_42, %c0_43], %97 {strides = array<i32>} : memref<48x128xf32, #tpu.memory_space<vmem>>, vector<32x128xf32>,
    %c5_i32 = arith.constant 5 : i32
    %99 = arith.cmpi eq, %arg0, %c5_i32 : i32
    %100 = arith.extui %99 : i1 to i32
    %c0_i32_44 = arith.constant 0 : i32
    %101 = arith.cmpi ne, %100, %c0_i32_44 : i32
    scf.if %101 {
      %c0_45 = arith.constant 0 : index
      %c0_46 = arith.constant 0 : index
      %102 = vector.load %arg6[%c0_45, %c0_46] : memref<2x32xf32, #tpu.memory_space<vmem>>, vector<2x32xf32>
      %cst_47 = arith.constant dense<0.000000e+00> : vector<2x128xf32>
      %103 = tpu.matmul %102, %97, %cst_47 {dimension_numbers = #tpu.dot_dimension_numbers<[1], [0], [0], [1], [0, 0, 1, 1], [], []>} : vector<2x32xf32>, vector<32x128xf32>, vector<2x128xf32> -> vector<2x128xf32>
      %c0_48 = arith.constant 0 : index
      %c0_49 = arith.constant 0 : index
      %104 = vector.load %arg7[%c0_48, %c0_49] : memref<128x128xf32, #tpu.memory_space<vmem>>, vector<128x128xf32>
      %cst_50 = arith.constant dense<0.000000e+00> : vector<2x128xf32>
      %105 = tpu.matmul %103, %104, %cst_50 {dimension_numbers = #tpu.dot_dimension_numbers<[1], [0], [0], [1], [0, 0, 1, 1], [], []>} : vector<2x128xf32>, vector<128x128xf32>, vector<2x128xf32> -> vector<2x128xf32>
      %c0_51 = arith.constant 0 : index
      %c0_52 = arith.constant 0 : index
      %106 = vector.load %arg8[%c0_51, %c0_52] : memref<1x128xf32, #tpu.memory_space<vmem>>, vector<1x128xf32>
      %107 = vector.broadcast %106 : vector<1x128xf32> to vector<2x128xf32>
      %108 = arith.addf %105, %107 : vector<2x128xf32>
      %c0_53 = arith.constant 0 : index
      %c0_54 = arith.constant 0 : index
      %109 = vector.load %arg9[%c0_53, %c0_54] : memref<2x128xf32, #tpu.memory_space<vmem>>, vector<2x128xf32>
      tpu.vector_store %arg9[%c0_53, %c0_54], %108 {strides = array<i32>} : memref<2x128xf32, #tpu.memory_space<vmem>>, vector<2x128xf32>,
    } else {
    }
    return
  }
  func.func @transform_0(%arg0: i32) -> (i32, i32) {
    %c0_i32 = arith.constant 0 : i32
    %c0_i32_0 = arith.constant 0 : i32
    %c0_i32_1 = arith.constant 0 : i32
    return %c0_i32, %c0_i32_0 : i32, i32
  }
  func.func @transform_1(%arg0: i32) -> (i32, i32) {
    %c0_i32 = arith.constant 0 : i32
    %c0_i32_0 = arith.constant 0 : i32
    %c0_i32_1 = arith.constant 0 : i32
    return %c0_i32, %c0_i32_0 : i32, i32
  }
  func.func @transform_2(%arg0: i32) -> (i32, i32) {
    %c0_i32 = arith.constant 0 : i32
    %c0_i32_0 = arith.constant 0 : i32
    %c0_i32_1 = arith.constant 0 : i32
    return %c0_i32, %c0_i32_0 : i32, i32
  }
  func.func @transform_3(%arg0: i32) -> (i32, i32, i32) {
    %c0_i32 = arith.constant 0 : i32
    %c0_i32_0 = arith.constant 0 : i32
    %c0_i32_1 = arith.constant 0 : i32
    %c0_i32_2 = arith.constant 0 : i32
    return %c0_i32, %c0_i32_0, %c0_i32_1 : i32, i32, i32
  }
  func.func @transform_4(%arg0: i32) -> (i32, i32, i32) {
    %c0_i32 = arith.constant 0 : i32
    %c0_i32_0 = arith.constant 0 : i32
    %c0_i32_1 = arith.constant 0 : i32
    return %arg0, %c0_i32, %c0_i32_0 : i32, i32, i32
  }
  func.func @transform_5(%arg0: i32) -> (i32, i32) {
    %c0_i32 = arith.constant 0 : i32
    %c0_i32_0 = arith.constant 0 : i32
    %c0_i32_1 = arith.constant 0 : i32
    return %c0_i32, %c0_i32_0 : i32, i32
  }
  func.func @transform_6(%arg0: i32) -> (i32, i32) {
    %c0_i32 = arith.constant 0 : i32
    %c0_i32_0 = arith.constant 0 : i32
    %c0_i32_1 = arith.constant 0 : i32
    return %c0_i32, %c0_i32_0 : i32, i32
  }
  func.func @transform_7(%arg0: i32) -> (i32, i32) {
    %c0_i32 = arith.constant 0 : i32
    %c0_i32_0 = arith.constant 0 : i32
    %c0_i32_1 = arith.constant 0 : i32
    return %c0_i32, %c0_i32_0 : i32, i32
  }
  func.func @transform_8(%arg0: i32) -> (i32, i32) {
    %c0_i32 = arith.constant 0 : i32
    %c0_i32_0 = arith.constant 0 : i32
    %c0_i32_1 = arith.constant 0 : i32
    return %c0_i32, %c0_i32_0 : i32, i32
  }
}

</mosaic_0001>

<bundles_post_ra>
// kernel: res8_forward.1
= control target key start
LH: loop header
LB: loop body
LE: loop exit
PB: predicated region body
PF: predicated region fallthrough
CT: control target
= control target key end

     0   :  { %13 = vsyncpa [#allocation5], 0  ;;  %s4584_s0 = inlined_call_operand.vmem [shape: f32[384,128], index: 0, kind: input, shape index: {}]   ;;  %s4585_s1 = inlined_call_operand.hbm [shape: f32[128,128], index: 1, kind: input, shape index: {}]   ;;  %s4586_s2 = inlined_call_operand.hbm [shape: f32[32,384], index: 2, kind: input, shape index: {}]   ;;  %s4587_s3 = inlined_call_operand.hbm [shape: f32[9,32,128], index: 3, kind: input, shape index: {}]   ;;  %s4588_s4 = inlined_call_operand.hbm [shape: bf16[6,1152,128], index: 4, kind: input, shape index: {}]   ;;  %s4589_s5 = inlined_call_operand.hbm [shape: f32[2,32], index: 5, kind: input, shape index: {}]   ;;  %s4590_s6 = inlined_call_operand.hbm [shape: f32[128,128], index: 6, kind: input, shape index: {}]   ;;  %s4591_s7 = inlined_call_operand.hbm [shape: f32[1,128], index: 7, kind: input, shape index: {}]   ;;  %s4592_s8 = inlined_call_operand.hbm [shape: f32[2,128], index: 8, kind: output, shape index: {}]  }
   0x1   :  { %14 = vsyncpa [#allocation8], 0 }
   0x2   :  { %15 = vsyncpa [#allocation11], 0 }
   0x3   :  { %17 = vsyncpa [#allocation11 + $0x1], 0 }
   0x4   :  { %18 = vsyncpa [#allocation14], 0 }
   0x5   :  { %19 = vsyncpa [#allocation6], 0  ;;  %s3902_s27 = smov 0   ;;  %s3904_s28 = smov 0  }
   0x6   :  { %s3906_s29 = smov 0   ;;  %s3908_s30 = smov 0  }
   0x7 LB: > { %s3840_s9 = smov [#allocation7]   ;;  %s3923_s11 = sadd.s32 4294967295, %s3838_s30   ;;  %s3838_s30 = sphi %s3908_s30, %s4616_s30   ;;  %s3834_s29 = sphi %s3906_s29, %s4615_s29   ;;  %s3830_s28 = sphi %s3904_s28, %s4614_s28   ;;  %s3826_s27 = sphi %s3902_s27, %s4613_s27  }
   0x8   : > { %s252_s10 = sshll.u32 %s3840_s9, 4  ;;  %p2799_p0 = scmp.ge.s32.totalorder %s3838_s30, 1  ;;  %s253_s10 = int_to_ptr.vmem [resolvable:$true] %s252_s10 }
   0x9   : > { %p4593_p1 = scmp.eq.s32.totalorder %s3923_s11, 0  ;;  %p224_p2 = scmp.lt.s32.totalorder %s3838_s30, 7 }
   0xa   : > { %s3841_s13 = smov [#allocation12]   ;;  %s3842_s16 = smov [#allocation13]  }
   0xb   : > { %p3929_p4 = pnand %p2799_p0, %p224_p2  ;;  %s279_s14 = sshll.u32 %s3841_s13, 4  ;;  %s280_s14 = int_to_ptr.vmem [resolvable:$true] %s279_s14 }
   0xc   : > { %s289_s17 = sshll.u32 %s3842_s16, 4  ;;  %s3587_s19 = scalar_lea.vmem %s253_s10, 1536  ;;  %s290_s17 = int_to_ptr.vmem [resolvable:$true] %s289_s17 }
   0xd   : > { %s4596_s12 = scalar_select %p3929_p4, 1, 0 }
   0xe   : > { %p3412_p5 = pneg %p3929_p4  ;;  %p3588_p8 = scmp.ne.s32.totalorder %s253_s10, %s3587_s19 }
   0xf   : > { %p3595_p11 = scmp.lt.s32.totalorder %s253_s10, %s253_s10  ;;  %p3596_p12 = scmp.lt.s32.totalorder %s3587_s19, %s3587_s19 }
  0x10   : > { %p3937_p6 = pnand %p3412_p5, %p4593_p1 }
  0x11   : > { %p3597_p13 = por %p3596_p12, %p3595_p11 }
  0x12   : > { %p3943_p7 = pneg %p3937_p6 }
  0x14   : > { %p3590_p9 = pnand %p3588_p8, %p3943_p7 }
  0x16   : > { %p3591_p10 = pneg %p3590_p9 }
  0x18   : > { %p3598_p0 = pnand %p3597_p13, %p3591_p10 }
  0x1a   : > { %3601 = shalt.err (!%p3598_p0)
}
  0x1b   : > { %s3843_s20 = smov 384   ;;  %s3844_s21 = smov 24  }
  0x1c   : > { %3418 = dma.hbm_to_vmem [thread:$0]  (!%p3937_p6), %s4586_s2, 1536, %s253_s10, [#allocation8], %s3843_s20, %s3843_s20, %s3844_s21  }
  0x1d   : > { %s3613_s24 = scalar_lea.vmem %s280_s14, 32  ;;  %p3621_p9 = scmp.lt.s32.totalorder %s280_s14, %s280_s14 }
  0x1e   : > { %p3614_p2 = scmp.ne.s32.totalorder %s280_s14, %s3613_s24  ;;  %p3622_p3 = scmp.lt.s32.totalorder %s3613_s24, %s3613_s24 }
  0x20   : > { %p3616_p5 = pnand %p3614_p2, %p3943_p7  ;;  %p3623_p1 = por %p3622_p3, %p3621_p9 }
  0x22   : > { %p3617_p8 = pneg %p3616_p5 }
  0x24   : > { %p3624_p11 = pnand %p3623_p1, %p3617_p8 }
  0x26   : > { %3627 = shalt.err (!%p3624_p11)
}
  0x27   : > { %3424 = dma.hbm_to_vmem [thread:$0]  (!%p3937_p6), %s4589_s5, 32, %s280_s14, [#allocation11]  }
  0x28   : > { %s3639_s9 = scalar_lea.vmem %s290_s17, 2048  ;;  %p3647_p0 = scmp.lt.s32.totalorder %s290_s17, %s290_s17 }
  0x29   : > { %p3640_p10 = scmp.ne.s32.totalorder %s290_s17, %s3639_s9  ;;  %p3648_p2 = scmp.lt.s32.totalorder %s3639_s9, %s3639_s9 }
  0x2b   : > { %p3642_p12 = pnand %p3640_p10, %p3943_p7  ;;  %p3649_p5 = por %p3648_p2, %p3647_p0 }
  0x2d   : > { %p3643_p13 = pneg %p3642_p12 }
  0x2f   : > { %p3650_p4 = pnand %p3649_p5, %p3643_p13 }
  0x31   : > { %3653 = shalt.err (!%p3650_p4)
}
  0x32   : > { %s3845_s10 = smov 128   ;;  %s3846_s13 = smov 8  }
  0x33   : > { %3427 = dma.hbm_to_vmem [thread:$0]  (!%p3937_p6), %s4590_s6, 2048, %s290_s17, [#allocation14], %s3845_s10, %s3845_s10, %s3846_s13  }
  0x34   : > { %s3847_s19 = smov [#allocation4]   ;;  %s3848_s21 = smov [#allocation9]  }
  0x35   : > { %s239_s20 = sshll.u32 %s3847_s19, 4  ;;  %s265_s22 = sshll.u32 %s3848_s21, 4  ;;  %s240_s20 = int_to_ptr.vmem [resolvable:$true] %s239_s20  ;;  %s266_s22 = int_to_ptr.vmem [resolvable:$true] %s265_s22 }
  0x36   : > { %s3665_s23 = scalar_lea.vmem %s240_s20, 2048  ;;  %p3673_p8 = scmp.lt.s32.totalorder %s240_s20, %s240_s20 }
  0x37   : > { %p3666_p1 = scmp.ne.s32.totalorder %s240_s20, %s3665_s23  ;;  %p3674_p9 = scmp.lt.s32.totalorder %s3665_s23, %s3665_s23 }
  0x39   : > { %p3668_p3 = pnand %p3666_p1, %p3943_p7  ;;  %p3675_p11 = por %p3674_p9, %p3673_p8 }
  0x3b   : > { %p3669_p4 = pneg %p3668_p3 }
  0x3d   : > { %p3676_p10 = pnand %p3675_p11, %p3669_p4 }
  0x3f   : > { %3679 = shalt.err (!%p3676_p10)
}
  0x40   : > { %3415 = dma.hbm_to_vmem [thread:$0]  (!%p3937_p6), %s4585_s1, 2048, %s240_s20, [#allocation5], %s3845_s10, %s3845_s10, %s3846_s13  }
  0x41   : > { %s3691_s25 = scalar_lea.vmem %s266_s22, 4608  ;;  %p3699_p2 = scmp.lt.s32.totalorder %s266_s22, %s266_s22 }
  0x42   : > { %p3692_p12 = scmp.ne.s32.totalorder %s266_s22, %s3691_s25  ;;  %p3700_p5 = scmp.lt.s32.totalorder %s3691_s25, %s3691_s25 }
  0x44   : > { %p3694_p13 = pnand %p3692_p12, %p3943_p7  ;;  %p3701_p1 = por %p3700_p5, %p3699_p2 }
  0x46   : > { %p3695_p0 = pneg %p3694_p13 }
  0x48   : > { %p3702_p3 = pnand %p3701_p1, %p3695_p0 }
  0x4a   : > { %3705 = shalt.err (!%p3702_p3)
}
  0x4b   : > { %3421 = dma.hbm_to_vmem [thread:$0]  (!%p3937_p6), %s4587_s3, 4608, %s266_s22, [#allocation8], %s3845_s10, %s3845_s10, %s3846_s13  }
  0x4c   : > { %s3849_s14 = smov [#allocation15]  }
  0x4d   : > { %s303_s16 = sshll.u32 %s3849_s14, 4  ;;  %s304_s16 = int_to_ptr.vmem [resolvable:$true] %s303_s16 }
  0x4e   : > { %s3717_s19 = scalar_lea.vmem %s304_s16, 16  ;;  %s3724_s20 = scalar_lea.vmem %s304_s16, 32 }
  0x4f   : > { %p3718_p4 = scmp.ne.s32.totalorder %s304_s16, %s3717_s19  ;;  %p3725_p11 = scmp.lt.s32.totalorder %s304_s16, %s304_s16 }
  0x50   : > { %p3726_p10 = scmp.lt.s32.totalorder %s3724_s20, %s3717_s19 }
  0x51   : > { %p3720_p8 = pnand %p3718_p4, %p3943_p7 }
  0x52   : > { %p3727_p12 = por %p3726_p10, %p3725_p11 }
  0x53   : > { %p3721_p9 = pneg %p3720_p8 }
  0x55   : > { %p3728_p13 = pnand %p3727_p12, %p3721_p9 }
  0x57   : > { %3731 = shalt.err (!%p3728_p13)
}
  0x58   : > { %3430 = dma.hbm_to_vmem [thread:$0]  (!%p3937_p6), %s4591_s7, 16, %s304_s16, [#allocation14]  }
  0x59   : > { %s3999_s18 = sadd.s32 1, %s3838_s30   ;;  %s116_s15 = sadd.s32 1, %s3834_s29 }
  0x5a   : > { %s113_s10 = ssub.s32 %s3838_s30, %s3999_s18  ;;  %p123_p7 = scmp.ne.s32.totalorder %s3834_s29, %s3830_s28 }
  0x5b   : > { %p114_p0 = scmp.eq.s32.totalorder %s113_s10, 0  ;;  %p124_p2 = scmp.eq.s32.totalorder %s3838_s30, 0 }
  0x5c   : > { %p129_p5 = scmp.ne.s32.totalorder %s3830_s28, %s3826_s27  ;;  %p3441_p1 = scmp.lt.s32.totalorder %s3838_s30, 6 }
  0x5d   : > { %s4011_s13 = scalar_select %p114_p0, %s3834_s29, %s116_s15  }
  0x5e   : > { %p125_p3 = por %p124_p2, %p123_p7  ;;  %p4599_p4 = scmp.eq.s32.totalorder %s3923_s11, 0 }
  0x5f   : > { %s314_s17 = sand.u32 1, %s3838_s30   ;;  %s316_s24 = sand.u32 1, %s3834_s29  }
  0x60   : > { %p4015_p8 = por %p4599_p4, %p129_p5  ;;  %s3379_s25 = smul.u32 576, %s316_s24 }
  0x61   : > { %s3380_s26 = smul.u32 9216, %s3838_s30  ;;  %p4022_p6 = pnand %p3441_p1, %p125_p3 }
  0x62   : > { %s4600_s22 = scalar_select %p4015_p8, 1, 0 }
  0x63   : > { %s4029_s27 = scalar_lea.hbm %s4588_s4, %s3380_s26  ;;  %s318_s19 = scalar_lea.vmem [#allocation10], %s3379_s25 }
  0x64   : > { %s325_s20 = sshll.u32 %s318_s19, 4  ;;  %s4033_s21 = scalar_lea.sflag [#allocation11], %s314_s17  ;;  %s4031_s20 = int_to_ptr.vmem [resolvable:$true] %s325_s20 }
  0x65   : > { %s3732_s30 = scalar_lea.hbm %s4029_s27, 9216  ;;  %p3734_p11 = pneg %p4022_p6 }
  0x66   : > { %p3733_p9 = scmp.ne.s32.totalorder %s4029_s27, %s3732_s30  ;;  %s3737_s10 = scalar_lea.hbm %s4588_s4, 55296 }
  0x67   : > { %p3738_p13 = scmp.lt.s32.totalorder %s4029_s27, %s4588_s4  ;;  %p3739_p7 = scmp.lt.s32.totalorder %s3737_s10, %s3732_s30 }
  0x68   : > { %p3735_p10 = pnand %p3734_p11, %p3733_p9 }
  0x69   : > { %p3740_p0 = por %p3739_p7, %p3738_p13 }
  0x6a   : > { %p3736_p12 = pneg %p3735_p10 }
  0x6c   : > { %p3741_p2 = pnand %p3740_p0, %p3736_p12 }
  0x6e   : > { %3744 = shalt.err (!%p3741_p2)
}
  0x6f   : > { %s3745_s17 = scalar_lea.vmem %s4031_s20, 9216  ;;  %s3850_s25 = smov [#allocation10]  }
  0x70   : > { %p3746_p5 = scmp.ne.s32.totalorder %s4031_s20, %s3745_s17  ;;  %s3750_s14 = sshll.u32 %s3850_s25, 4  ;;  %s3751_s14 = int_to_ptr.vmem [resolvable:$false] %s3750_s14 }
  0x71   : > { %s3752_s16 = scalar_lea.vmem %s3751_s14, 18432  ;;  %p3753_p4 = scmp.lt.s32.totalorder %s4031_s20, %s3751_s14 }
  0x72   : > { %p3748_p1 = pnand %p3746_p5, %p3734_p11  ;;  %p3754_p9 = scmp.lt.s32.totalorder %s3752_s16, %s3745_s17 }
  0x74   : > { %p3749_p3 = pneg %p3748_p1  ;;  %p3755_p10 = por %p3754_p9, %p3753_p4 }
  0x76   : > { %p3756_p8 = pnand %p3755_p10, %p3749_p3 }
  0x78   : > { %3759 = shalt.err (!%p3756_p8)
}
  0x79   : > { %s3851_s19 = smov 64   ;;  %s3852_s30 = smov 4  }
  0x7a   : > { %3434 = dma.hbm_to_vmem [thread:$0]  (!%p4022_p6), %s4029_s27, 9216, %s4031_s20, %s4033_s21, %s3851_s19, %s3851_s19, %s3852_s30  }
  0x7b   : > { %p4602_p11 = scmp.ne.s32.totalorder %s4596_s12, 0 }
  0x7c   : > { %p4603_p12 = scmp.eq.s32.totalorder (!%p4602_p11), %s3923_s11, 0 }
  0x7d   : > { %337 = sbr.rel (%p4602_p11) target bundleno = 1478 (0x5c6), region = 52 }
  0x82   : > { %3801 = dma.done.wait (%p4603_p12), [#allocation5], 2048   ;;  %p4604_p13 = pmov %p4603_p12 }
  0x83   : > { %p4605_p7 = pmov %p4603_p12 }
  0x84   : > { %3803 = vsyncadd (%p4604_p13), [#allocation5], 4294965248 }
  0x85   : > { %3805 = dma.done.wait (%p4605_p7), [#allocation8], 6144   ;;  %p4606_p8 = pmov %p4605_p7 }
  0x86   : > { %s351_s9 = sand.u32 1, %s3923_s11   ;;  %s353_s27 = sand.u32 1, %s3830_s28  }
  0x87   : > { %3807 = vsyncadd (%p4606_p8), [#allocation8], 4294961152  ;;  %s3381_s20 = smul.u32 576, %s353_s27  ;;  %s352_s12 = scalar_lea.sflag [#allocation11], %s351_s9 }
  0x88   : > { %p4607_p6 = scmp.ne.s32.totalorder %s4600_s22, 0 }
  0x89   : > { %s4066_s21 = scalar_lea.vmem [#allocation10], %s3381_s20 }
  0x8a   : > { %3809 = dma.done.wait (%p4607_p6), %s352_s12, 9216  }
  0x8b   : > { %3811 = vsyncadd (%p4607_p6), %s352_s12, 4294958080  ;;  %p4608_p0 = pmov %p4605_p7 }
  0x8d   : > { %3813 = dma.done.wait (%p4608_p0), [#allocation11], 32   ;;  %p4609_p2 = pmov %p4608_p0 }
  0x8e   : > { %p4610_p5 = pmov %p4608_p0 }
  0x8f   : > { %3815 = vsyncadd (%p4609_p2), [#allocation11], 4294967264 }
  0x90   : > { %3817 = dma.done.wait (%p4610_p5), [#allocation14], 2064   ;;  %p4611_p1 = pmov %p4608_p0 }
  0x91   : > { %p4612_p3 = scmp.ne.s32.totalorder %s3923_s11, 0 }
  0x92   : > { %3819 = vsyncadd (%p4611_p1), [#allocation14], 4294965232 }
  0x93   : > { %399 = sbr.rel (%p4612_p3) target bundleno = 706 (0x2c2), region = 84 }
  0x98   : > { %v469_v0 = vld [vmem:[#allocation4 + $0x78] sm:$0xff]  ;;  %v468_v1 = vld [vmem:[#allocation4 + $0x70] sm:$0xff]  ;;  %v467_v2 = vld [vmem:[#allocation4 + $0x68] sm:$0xff] }
  0x99   : > { %3171 = vmatprep.subr.mxu0 %v469_v0  ;;  %v466_v3 = vld [vmem:[#allocation4 + $0x60] sm:$0xff]  ;;  %v406_v4 = vld [vmem:[%s4584_s0] sm:$0xff]  ;;  %v465_v5 = vld [vmem:[#allocation4 + $0x58] sm:$0xff] }
  0x9a   : > { %3172 = vmatpush3.msra.mxu0 %v469_v0  ;;  %3203 = vmatprep.mubr.f32.mxu0 %v406_v4  ;;  %v464_v6 = vld [vmem:[#allocation4 + $0x50] sm:$0xff]  ;;  %v463_v7 = vld [vmem:[#allocation4 + $0x48] sm:$0xff]  ;;  %v462_v8 = vld [vmem:[#allocation4 + $0x40] sm:$0xff] }
  0x9b   : > { %3173 = vmatprep.subr.mxu0 %v468_v1  ;;  %v461_v9 = vld [vmem:[#allocation4 + $0x38] sm:$0xff]  ;;  %v460_v10 = vld [vmem:[#allocation4 + $0x30] sm:$0xff]  ;;  %v459_v11 = vld [vmem:[#allocation4 + $0x28] sm:$0xff] }
  0x9c   : > { %3174 = vmatpush3.msra.mxu0 %v468_v1  ;;  %v458_v12 = vld [vmem:[#allocation4 + $0x20] sm:$0xff]  ;;  %v457_v13 = vld [vmem:[#allocation4 + $0x18] sm:$0xff]  ;;  %v456_v14 = vld [vmem:[#allocation4 + $0x10] sm:$0xff] }
  0x9d   : > { %3175 = vmatprep.subr.mxu0 %v467_v2  ;;  %v455_v15 = vld [vmem:[#allocation4 + $0x8] sm:$0xff]  ;;  %v454_v16 = vld [vmem:[#allocation4] sm:$0xff]  ;;  %v407_v17 = vld [vmem:[%s4584_s0 + $0x8] sm:$0xff] }
  0x9e   : > { %3176 = vmatpush3.msra.mxu0 %v467_v2  ;;  %v408_v18 = vld [vmem:[%s4584_s0 + $0x10] sm:$0xff]  ;;  %v409_v19 = vld [vmem:[%s4584_s0 + $0x18] sm:$0xff]  ;;  %v410_v20 = vld [vmem:[%s4584_s0 + $0x20] sm:$0xff] }
  0x9f   : > { %3177 = vmatprep.subr.mxu0 %v466_v3  ;;  %v411_v21 = vld [vmem:[%s4584_s0 + $0x28] sm:$0xff]  ;;  %v412_v22 = vld [vmem:[%s4584_s0 + $0x30] sm:$0xff]  ;;  %v413_v23 = vld [vmem:[%s4584_s0 + $0x38] sm:$0xff] }
  0xa0   : > { %3178 = vmatpush3.msra.mxu0 %v466_v3  ;;  %v414_v24 = vld [vmem:[%s4584_s0 + $0x40] sm:$0xff]  ;;  %v415_v25 = vld [vmem:[%s4584_s0 + $0x48] sm:$0xff]  ;;  %v416_v26 = vld [vmem:[%s4584_s0 + $0x50] sm:$0xff] }
  0xa1   : > { %3179 = vmatprep.subr.mxu0 %v465_v5  ;;  %v417_v27 = vld [vmem:[%s4584_s0 + $0x58] sm:$0xff]  ;;  %v418_v28 = vld [vmem:[%s4584_s0 + $0x60] sm:$0xff]  ;;  %v419_v29 = vld [vmem:[%s4584_s0 + $0x68] sm:$0xff] }
  0xa2   : > { %3180 = vmatpush3.msra.mxu0 %v465_v5  ;;  %v420_v30 = vld [vmem:[%s4584_s0 + $0x70] sm:$0xff]  ;;  %v421_v31 = vld [vmem:[%s4584_s0 + $0x78] sm:$0xff]  ;;  %v422_v32 = vld [vmem:[%s4584_s0 + $0x80] sm:$0xff] }
  0xa3   : > { %3181 = vmatprep.subr.mxu0 %v464_v6  ;;  %v423_v33 = vld [vmem:[%s4584_s0 + $0x88] sm:$0xff]  ;;  %v424_v34 = vld [vmem:[%s4584_s0 + $0x90] sm:$0xff]  ;;  %v425_v35 = vld [vmem:[%s4584_s0 + $0x98] sm:$0xff] }
  0xa4   : > { %3182 = vmatpush3.msra.mxu0 %v464_v6  ;;  %v426_v36 = vld [vmem:[%s4584_s0 + $0xa0] sm:$0xff]  ;;  %v427_v37 = vld [vmem:[%s4584_s0 + $0xa8] sm:$0xff]  ;;  %v428_v38 = vld [vmem:[%s4584_s0 + $0xb0] sm:$0xff] }
  0xa5   : > { %3183 = vmatprep.subr.mxu0 %v463_v7  ;;  %v429_v39 = vld [vmem:[%s4584_s0 + $0xb8] sm:$0xff]  ;;  %v430_v40 = vld [vmem:[%s4584_s0 + $0xc0] sm:$0xff]  ;;  %v431_v41 = vld [vmem:[%s4584_s0 + $0xc8] sm:$0xff] }
  0xa6   : > { %3184 = vmatpush3.msra.mxu0 %v463_v7  ;;  %v432_v42 = vld [vmem:[%s4584_s0 + $0xd0] sm:$0xff]  ;;  %v433_v43 = vld [vmem:[%s4584_s0 + $0xd8] sm:$0xff]  ;;  %v434_v44 = vld [vmem:[%s4584_s0 + $0xe0] sm:$0xff] }
  0xa7   : > { %3185 = vmatprep.subr.mxu0 %v462_v8  ;;  %v435_v45 = vld [vmem:[%s4584_s0 + $0xe8] sm:$0xff]  ;;  %v436_v46 = vld [vmem:[%s4584_s0 + $0xf0] sm:$0xff]  ;;  %v437_v47 = vld [vmem:[%s4584_s0 + $0xf8] sm:$0xff] }
  0xa8   : > { %3186 = vmatpush3.msra.mxu0 %v462_v8  ;;  %v438_v48 = vld [vmem:[%s4584_s0 + $0x100] sm:$0xff]  ;;  %v439_v49 = vld [vmem:[%s4584_s0 + $0x108] sm:$0xff]  ;;  %v440_v50 = vld [vmem:[%s4584_s0 + $0x110] sm:$0xff] }
  0xa9   : > { %3187 = vmatprep.subr.mxu0 %v461_v9  ;;  %v441_v51 = vld [vmem:[%s4584_s0 + $0x118] sm:$0xff]  ;;  %v442_v52 = vld [vmem:[%s4584_s0 + $0x120] sm:$0xff]  ;;  %v443_v53 = vld [vmem:[%s4584_s0 + $0x128] sm:$0xff] }
  0xaa   : > { %3188 = vmatpush3.msra.mxu0 %v461_v9  ;;  %v444_v54 = vld [vmem:[%s4584_s0 + $0x130] sm:$0xff]  ;;  %v445_v55 = vld [vmem:[%s4584_s0 + $0x138] sm:$0xff]  ;;  %v446_v56 = vld [vmem:[%s4584_s0 + $0x140] sm:$0xff] }
  0xab   : > { %3189 = vmatprep.subr.mxu0 %v460_v10  ;;  %v447_v57 = vld [vmem:[%s4584_s0 + $0x148] sm:$0xff]  ;;  %v448_v58 = vld [vmem:[%s4584_s0 + $0x150] sm:$0xff]  ;;  %v449_v59 = vld [vmem:[%s4584_s0 + $0x158] sm:$0xff] }
  0xac   : > { %3190 = vmatpush3.msra.mxu0 %v460_v10  ;;  %v450_v60 = vld [vmem:[%s4584_s0 + $0x160] sm:$0xff]  ;;  %v451_v61 = vld [vmem:[%s4584_s0 + $0x168] sm:$0xff]  ;;  %v452_v62 = vld [vmem:[%s4584_s0 + $0x170] sm:$0xff] }
  0xad   : > { %3191 = vmatprep.subr.mxu0 %v459_v11  ;;  %v453_v63 = vld [vmem:[%s4584_s0 + $0x178] sm:$0xff] }
  0xae   : > { %3192 = vmatpush3.msra.mxu0 %v459_v11  ;;  %v824_v0 = vld [vmem:[#allocation7 + $0x8] sm:$0xff] }
  0xaf   : > { %3193 = vmatprep.subr.mxu0 %v458_v12  ;;  %899 = vmatprep.mubr.f32.mxu1 %v824_v0 }
  0xb0   : > { %3194 = vmatpush3.msra.mxu0 %v458_v12 }
  0xb1   : > { %3195 = vmatprep.subr.mxu0 %v457_v13 }
  0xb2   : > { %3196 = vmatpush3.msra.mxu0 %v457_v13 }
  0xb3   : > { %3197 = vmatprep.subr.mxu0 %v456_v14 }
  0xb4   : > { %3198 = vmatpush3.msra.mxu0 %v456_v14 }
  0xb5   : > { %3199 = vmatprep.subr.mxu0 %v455_v15 }
  0xb6   : > { %3200 = vmatpush3.msra.mxu0 %v455_v15 }
  0xb7   : > { %3201 = vmatprep.subr.mxu0 %v454_v16 }
  0xb8   : > { %3202 = vmatpush3.msra.mxu0 %v454_v16 }
  0xb9   : > { %3204 = vmatmul.mubr.f32.vlgmr.msra.gmra.mxu0 %v407_v17 }
  0xba   : > { %3206 = vmatprep.mubr.f32.mxu0 %v408_v18 }
  0xbd   : > { %3207 = vmatmul.mubr.f32.gmra.mxu0 %v409_v19 }
  0xbe   : > { %3209 = vmatprep.mubr.f32.mxu0 %v410_v20 }
  0xc1   : > { %3210 = vmatmul.mubr.f32.gmra.mxu0 %v411_v21 }
  0xc2   : > { %3212 = vmatprep.mubr.f32.mxu0 %v412_v22 }
  0xc5   : > { %3213 = vmatmul.mubr.f32.gmra.mxu0 %v413_v23 }
  0xc6   : > { %3215 = vmatprep.mubr.f32.mxu0 %v414_v24 }
  0xc9   : > { %3216 = vmatmul.mubr.f32.gmra.mxu0 %v415_v25 }
  0xca   : > { %3218 = vmatprep.mubr.f32.mxu0 %v416_v26 }
  0xcd   : > { %3219 = vmatmul.mubr.f32.gmra.mxu0 %v417_v27 }
  0xce   : > { %3221 = vmatprep.mubr.f32.mxu0 %v418_v28 }
  0xd1   : > { %3222 = vmatmul.mubr.f32.gmra.mxu0 %v419_v29 }
  0xd2   : > { %3224 = vmatprep.mubr.f32.mxu0 %v420_v30 }
  0xd5   : > { %3225 = vmatmul.mubr.f32.gmra.mxu0 %v421_v31 }
  0xd6   : > { %3227 = vmatprep.mubr.f32.mxu0 %v422_v32 }
  0xd9   : > { %3228 = vmatmul.mubr.f32.gmra.mxu0 %v423_v33 }
  0xda   : > { %3230 = vmatprep.mubr.f32.mxu0 %v424_v34 }
  0xdd   : > { %3231 = vmatmul.mubr.f32.gmra.mxu0 %v425_v35 }
  0xde   : > { %3233 = vmatprep.mubr.f32.mxu0 %v426_v36 }
  0xe1   : > { %3234 = vmatmul.mubr.f32.gmra.mxu0 %v427_v37 }
  0xe2   : > { %3236 = vmatprep.mubr.f32.mxu0 %v428_v38 }
  0xe5   : > { %3237 = vmatmul.mubr.f32.gmra.mxu0 %v429_v39 }
  0xe6   : > { %3239 = vmatprep.mubr.f32.mxu0 %v430_v40 }
  0xe9   : > { %3240 = vmatmul.mubr.f32.gmra.mxu0 %v431_v41 }
  0xea   : > { %3242 = vmatprep.mubr.f32.mxu0 %v432_v42 }
  0xed   : > { %3243 = vmatmul.mubr.f32.gmra.mxu0 %v433_v43 }
  0xee   : > { %3245 = vmatprep.mubr.f32.mxu0 %v434_v44 }
  0xf1   : > { %3246 = vmatmul.mubr.f32.gmra.mxu0 %v435_v45 }
  0xf2   : > { %3248 = vmatprep.mubr.f32.mxu0 %v436_v46 }
  0xf5   : > { %3249 = vmatmul.mubr.f32.gmra.mxu0 %v437_v47 }
  0xf6   : > { %3251 = vmatprep.mubr.f32.mxu0 %v438_v48 }
  0xf9   : > { %3252 = vmatmul.mubr.f32.gmra.mxu0 %v439_v49 }
  0xfa   : > { %3254 = vmatprep.mubr.f32.mxu0 %v440_v50 }
  0xfd   : > { %3255 = vmatmul.mubr.f32.gmra.mxu0 %v441_v51 }
  0xfe   : > { %3257 = vmatprep.mubr.f32.mxu0 %v442_v52 }
 0x101   : > { %3258 = vmatmul.mubr.f32.gmra.mxu0 %v443_v53 }
 0x102   : > { %3260 = vmatprep.mubr.f32.mxu0 %v444_v54 }
 0x105   : > { %3261 = vmatmul.mubr.f32.gmra.mxu0 %v445_v55 }
 0x106   : > { %3263 = vmatprep.mubr.f32.mxu0 %v446_v56 }
 0x109   : > { %3264 = vmatmul.mubr.f32.gmra.mxu0 %v447_v57 }
 0x10a   : > { %3266 = vmatprep.mubr.f32.mxu0 %v448_v58 }
 0x10d   : > { %3267 = vmatmul.mubr.f32.gmra.mxu0 %v449_v59 }
 0x10e   : > { %3269 = vmatprep.mubr.f32.mxu0 %v450_v60 }
 0x111   : > { %3270 = vmatmul.mubr.f32.gmra.mxu0 %v451_v61 }
 0x112   : > { %3272 = vmatprep.mubr.f32.mxu0 %v452_v62 }
 0x115   : > { %3273 = vmatmul.mubr.f32.gmra.mxu0 %v453_v63 }
 0x179   : > { %v4226_v1 = vpop.f32.mrf.mxu0 }
 0x17b   : > { %v4228_v2 = vpop.f32.mrf.mxu0 }
 0x17d   : > { %v4230_v3 = vpop.f32.mrf.mxu0 }
 0x17f   : > { %v4232_v4 = vpop.f32.mrf.mxu0 }
 0x181   : > { %v4234_v5 = vpop.f32.mrf.mxu0 }
 0x182   : > { %v780_v63 = vmax.f32 %v4234_v5, 0.0  ;;  %v777_v5 = vmax.f32 %v4232_v4, 0.0  ;;  %v827_v4 = vld [vmem:[#allocation7 + $0x20] sm:$0xff] }
 0x183   : > { %v4236_v6 = vpop.f32.mrf.mxu0 }
 0x185   : > { %v4238_v7 = vpop.f32.mrf.mxu0 }
 0x186   : > { %v782_v57 = vmax.f32 %v4238_v7, 0.0 }
 0x187   : > { %v4240_v8 = vpop.f32.mrf.mxu0 }
 0x188   : > { %v781_v60 = vmax.f32 %v4240_v8, 0.0 }
 0x189   : > { %v3217_v9 = vpop.f32.mrf.mxu0 }
 0x18a   : > { %v784_v51 = vmax.f32 %v3217_v9, 0.0  ;;  %v779_v9 = vmax.f32 %v4236_v6, 0.0  ;;  %v776_v6 = vmax.f32 %v4226_v1, 0.0  ;;  %v826_v1 = vld [vmem:[#allocation7 + $0x18] sm:$0xff] }
 0x18b   : > { %v4242_v10 = vpop.f32.mrf.mxu0 }
 0x18c   : > { %v783_v54 = vmax.f32 %v4242_v10, 0.0 }
 0x18d   : > { %v3220_v11 = vpop.f32.mrf.mxu0 }
 0x18e   : > { %v786_v45 = vmax.f32 %v3220_v11, 0.0  ;;  %v778_v11 = vmax.f32 %v4230_v3, 0.0  ;;  %v775_v3 = vmax.f32 %v4228_v2, 0.0  ;;  %v829_v2 = vld [vmem:[#allocation7 + $0x30] sm:$0xff] }
 0x18f   : > { %v586_v12 = vpop.f32.mrf.mxu0 }
 0x190   : > { %v785_v48 = vmax.f32 %v586_v12, 0.0 }
 0x191   : > { %v3223_v13 = vpop.f32.mrf.mxu0 }
 0x192   : > { %v788_v39 = vmax.f32 %v3223_v13, 0.0 }
 0x193   : > { %v596_v14 = vpop.f32.mrf.mxu0 }
 0x194   : > { %v787_v42 = vmax.f32 %v596_v14, 0.0 }
 0x195   : > { %v3226_v15 = vpop.f32.mrf.mxu0 }
 0x196   : > { %v790_v33 = vmax.f32 %v3226_v15, 0.0 }
 0x197   : > { %v606_v16 = vpop.f32.mrf.mxu0 }
 0x198   : > { %v789_v36 = vmax.f32 %v606_v16, 0.0 }
 0x199   : > { %v4244_v17 = vpop.f32.mrf.mxu0 }
 0x19a   : > { %v792_v15 = vmax.f32 %v4244_v17, 0.0 }
 0x19b   : > { %v4246_v18 = vpop.f32.mrf.mxu0 }
 0x19d   : > { %v4248_v19 = vpop.f32.mrf.mxu0 }
 0x19e   : > { %v794_v8 = vmax.f32 %v4248_v19, 0.0  ;;  %v791_v19 = vmax.f32 %v4246_v18, 0.0  ;;  %v830_v18 = vld [vmem:[#allocation7 + $0x38] sm:$0xff] }
 0x19f   : > { %v4250_v20 = vpop.f32.mrf.mxu0 }
 0x1a0   : > { %v793_v13 = vmax.f32 %v4250_v20, 0.0  ;;  %v823_v20 = vld [vmem:[#allocation7] sm:$0xff] }
 0x1a1   : > { %v4252_v21 = vpop.f32.mrf.mxu0 }
 0x1a2   : > { %v796_v62 = vmax.f32 %v4252_v21, 0.0 }
 0x1a3   : > { %v4254_v22 = vpop.f32.mrf.mxu0 }
 0x1a4   : > { %v795_v7 = vmax.f32 %v4254_v22, 0.0 }
 0x1a5   : > { %v3238_v23 = vpop.f32.mrf.mxu0 }
 0x1a6   : > { %v798_v56 = vmax.f32 %v3238_v23, 0.0 }
 0x1a7   : > { %v646_v24 = vpop.f32.mrf.mxu0 }
 0x1a8   : > { %v797_v59 = vmax.f32 %v646_v24, 0.0 }
 0x1a9   : > { %v3241_v25 = vpop.f32.mrf.mxu0 }
 0x1aa   : > { %v800_v50 = vmax.f32 %v3241_v25, 0.0 }
 0x1ab   : > { %v656_v26 = vpop.f32.mrf.mxu0 }
 0x1ac   : > { %v799_v53 = vmax.f32 %v656_v26, 0.0 }
 0x1ad   : > { %v3244_v27 = vpop.f32.mrf.mxu0 }
 0x1ae   : > { %v802_v44 = vmax.f32 %v3244_v27, 0.0  ;;  %v833_v27 = vld [vmem:[#allocation7 + $0x50] sm:$0xff] }
 0x1af   : > { %v666_v28 = vpop.f32.mrf.mxu0 }
 0x1b0   : > { %v801_v47 = vmax.f32 %v666_v28, 0.0 }
 0x1b1   : > { %v3247_v29 = vpop.f32.mrf.mxu0 }
 0x1b2   : > { %v804_v38 = vmax.f32 %v3247_v29, 0.0  ;;  %v832_v29 = vld [vmem:[#allocation7 + $0x48] sm:$0xff] }
 0x1b3   : > { %v676_v30 = vpop.f32.mrf.mxu0 }
 0x1b4   : > { %v803_v41 = vmax.f32 %v676_v30, 0.0 }
 0x1b5   : > { %v3250_v31 = vpop.f32.mrf.mxu0 }
 0x1b6   : > { %v806_v32 = vmax.f32 %v3250_v31, 0.0  ;;  %v825_v31 = vld [vmem:[#allocation7 + $0x10] sm:$0xff] }
 0x1b7   : > { %v686_v34 = vpop.f32.mrf.mxu0 }
 0x1b8   : > { %v805_v35 = vmax.f32 %v686_v34, 0.0  ;;  %2963 = vmatprep.subr.mxu1 %v806_v32 }
 0x1b9   : > { %v4256_v37 = vpop.f32.mrf.mxu0  ;;  %2964 = vmatpush3.msra.mxu1 %v790_v33 }
 0x1ba   : > { %2965 = vmatprep.subr.mxu1 %v805_v35 }
 0x1bb   : > { %v4258_v40 = vpop.f32.mrf.mxu0  ;;  %2966 = vmatpush3.msra.mxu1 %v789_v36 }
 0x1bc   : > { %2967 = vmatprep.subr.mxu1 %v804_v38 }
 0x1bd   : > { %v4260_v43 = vpop.f32.mrf.mxu0  ;;  %2968 = vmatpush3.msra.mxu1 %v788_v39 }
 0x1be   : > { %2969 = vmatprep.subr.mxu1 %v803_v41  ;;  %v810_v38 = vmax.f32 %v4260_v43, 0.0  ;;  %v808_v41 = vmax.f32 %v4256_v37, 0.0  ;;  %v834_v43 = vld [vmem:[#allocation7 + $0x58] sm:$0xff] }
 0x1bf   : > { %v4262_v46 = vpop.f32.mrf.mxu0  ;;  %2970 = vmatpush3.msra.mxu1 %v787_v42  ;;  %v807_v42 = vmax.f32 %v4258_v40, 0.0 }
 0x1c0   : > { %2971 = vmatprep.subr.mxu1 %v802_v44  ;;  %v809_v39 = vmax.f32 %v4262_v46, 0.0  ;;  %v828_v44 = vld [vmem:[#allocation7 + $0x28] sm:$0xff] }
 0x1c1   : > { %v4264_v49 = vpop.f32.mrf.mxu0  ;;  %2972 = vmatpush3.msra.mxu1 %v786_v45  ;;  %v831_v45 = vld [vmem:[#allocation7 + $0x40] sm:$0xff] }
 0x1c2   : > { %2973 = vmatprep.subr.mxu1 %v801_v47  ;;  %v812_v35 = vmax.f32 %v4264_v49, 0.0  ;;  %v3853_v47 = vmov 0.0  }
 0x1c3   : > { %v4266_v52 = vpop.f32.mrf.mxu0  ;;  %2974 = vmatpush3.msra.mxu1 %v785_v48  ;;  %400 = vst [vmem:[#allocation2 + $0x28] sm:$0xff] %v3853_v47  ;;  %405 = vst [vmem:[#allocation2 + $0x20] sm:$0xff] %v3853_v47 }
 0x1c4   : > { %2975 = vmatprep.subr.mxu1 %v800_v50  ;;  %v811_v36 = vmax.f32 %v4266_v52, 0.0 }
 0x1c5   : > { %v4269_v55 = vpop.f32.mrf.mxu0  ;;  %2976 = vmatpush3.msra.mxu1 %v784_v51 }
 0x1c6   : > { %2977 = vmatprep.subr.mxu1 %v799_v53  ;;  %v814_v33 = vmax.f32 %v4269_v55, 0.0 }
 0x1c7   : > { %v4272_v58 = vpop.f32.mrf.mxu0  ;;  %2978 = vmatpush3.msra.mxu1 %v783_v54 }
 0x1c8   : > { %2979 = vmatprep.subr.mxu1 %v798_v56  ;;  %v813_v34 = vmax.f32 %v4272_v58, 0.0 }
 0x1c9   : > { %v4275_v61 = vpop.f32.mrf.mxu0  ;;  %2980 = vmatpush3.msra.mxu1 %v782_v57 }
 0x1ca   : > { %2981 = vmatprep.subr.mxu1 %v797_v59  ;;  %v816_v30 = vmax.f32 %v4275_v61, 0.0 }
 0x1cb   : > { %v4279_v0 = vpop.f32.mrf.mxu0  ;;  %2982 = vmatpush3.msra.mxu1 %v781_v60 }
 0x1cc   : > { %2983 = vmatprep.subr.mxu1 %v796_v62  ;;  %v815_v32 = vmax.f32 %v4279_v0, 0.0 }
 0x1cd   : > { %v3268_v10 = vpop.f32.mrf.mxu0  ;;  %2984 = vmatpush3.msra.mxu1 %v780_v63 }
 0x1ce   : > { %2985 = vmatprep.subr.mxu1 %v795_v7  ;;  %v818_v26 = vmax.f32 %v3268_v10, 0.0 }
 0x1cf   : > { %v746_v12 = vpop.f32.mrf.mxu0  ;;  %2986 = vmatpush3.msra.mxu1 %v779_v9 }
 0x1d0   : > { %2987 = vmatprep.subr.mxu1 %v794_v8  ;;  %v817_v28 = vmax.f32 %v746_v12, 0.0 }
 0x1d1   : > { %v3271_v14 = vpop.f32.mrf.mxu0  ;;  %2988 = vmatpush3.msra.mxu1 %v778_v11 }
 0x1d2   : > { %2989 = vmatprep.subr.mxu1 %v793_v13  ;;  %v820_v17 = vmax.f32 %v3271_v14, 0.0 }
 0x1d3   : > { %v756_v16 = vpop.f32.mrf.mxu0  ;;  %2990 = vmatpush3.msra.mxu1 %v777_v5 }
 0x1d4   : > { %2991 = vmatprep.subr.mxu1 %v792_v15  ;;  %v819_v25 = vmax.f32 %v756_v16, 0.0 }
 0x1d5   : > { %v3274_v21 = vpop.f32.mrf.mxu0  ;;  %2992 = vmatpush3.msra.mxu1 %v776_v6 }
 0x1d6   : > { %v822_v22 = vmax.f32 %v3274_v21, 0.0  ;;  %2993 = vmatprep.subr.mxu1 %v791_v19 }
 0x1d7   : > { %v766_v23 = vpop.f32.mrf.mxu0  ;;  %2994 = vmatpush3.msra.mxu1 %v775_v3 }
 0x1d8   : > { %v821_v24 = vmax.f32 %v766_v23, 0.0  ;;  %900 = vmatmul.mubr.f32.vlgmr.msra.gmra.mxu1 %v823_v20  ;;  %3275 = vmatprep.subr.mxu1 %v822_v22 }
 0x1d9   : > { %3276 = vmatpush3.msra.mxu1 %v822_v22  ;;  %904 = vmatprep.mubr.f32.mxu1 %v827_v4 }
 0x1da   : > { %3277 = vmatprep.subr.mxu1 %v821_v24 }
 0x1db   : > { %3278 = vmatpush3.msra.mxu1 %v821_v24 }
 0x1dc   : > { %3279 = vmatprep.subr.mxu1 %v820_v17  ;;  %905 = vmatmul.mubr.f32.gmra.mxu1 %v826_v1 }
 0x1dd   : > { %3280 = vmatpush3.msra.mxu1 %v820_v17  ;;  %909 = vmatprep.mubr.f32.mxu1 %v830_v18 }
 0x1de   : > { %3281 = vmatprep.subr.mxu1 %v819_v25 }
 0x1df   : > { %3282 = vmatpush3.msra.mxu1 %v819_v25 }
 0x1e0   : > { %3283 = vmatprep.subr.mxu1 %v818_v26  ;;  %910 = vmatmul.mubr.f32.gmra.mxu1 %v829_v2 }
 0x1e1   : > { %3284 = vmatpush3.msra.mxu1 %v818_v26  ;;  %914 = vmatprep.mubr.f32.mxu1 %v833_v27 }
 0x1e2   : > { %3285 = vmatprep.subr.mxu1 %v817_v28 }
 0x1e3   : > { %3286 = vmatpush3.msra.mxu1 %v817_v28 }
 0x1e4   : > { %3287 = vmatprep.subr.mxu1 %v816_v30  ;;  %915 = vmatmul.mubr.f32.gmra.mxu1 %v832_v29 }
 0x1e5   : > { %3288 = vmatpush3.msra.mxu1 %v816_v30  ;;  %3307 = vmatprep.mubr.f32.mxu1 %v825_v31 }
 0x1e6   : > { %3289 = vmatprep.subr.mxu1 %v815_v32 }
 0x1e7   : > { %3290 = vmatpush3.msra.mxu1 %v815_v32 }
 0x1e8   : > { %3291 = vmatprep.subr.mxu1 %v814_v33 }
 0x1e9   : > { %3292 = vmatpush3.msra.mxu1 %v814_v33 }
 0x1ea   : > { %3293 = vmatprep.subr.mxu1 %v813_v34 }
 0x1eb   : > { %3294 = vmatpush3.msra.mxu1 %v813_v34 }
 0x1ec   : > { %3295 = vmatprep.subr.mxu1 %v812_v35 }
 0x1ed   : > { %3296 = vmatpush3.msra.mxu1 %v812_v35 }
 0x1ee   : > { %3297 = vmatprep.subr.mxu1 %v811_v36 }
 0x1ef   : > { %3298 = vmatpush3.msra.mxu1 %v811_v36 }
 0x1f0   : > { %3299 = vmatprep.subr.mxu1 %v810_v38 }
 0x1f1   : > { %3300 = vmatpush3.msra.mxu1 %v810_v38 }
 0x1f2   : > { %3301 = vmatprep.subr.mxu1 %v809_v39 }
 0x1f3   : > { %3302 = vmatpush3.msra.mxu1 %v809_v39 }
 0x1f4   : > { %3303 = vmatprep.subr.mxu1 %v808_v41 }
 0x1f5   : > { %3304 = vmatpush3.msra.mxu1 %v808_v41 }
 0x1f6   : > { %3305 = vmatprep.subr.mxu1 %v807_v42 }
 0x1f7   : > { %3306 = vmatpush3.msra.mxu1 %v807_v42 }
 0x1f8   : > { %3308 = vmatmul.mubr.f32.vlgmr.msra.gmra.mxu1 %v828_v44 }
 0x1f9   : > { %3310 = vmatprep.mubr.f32.mxu1 %v831_v45 }
 0x1fc   : > { %3311 = vmatmul.mubr.f32.gmra.mxu1 %v834_v43 }
 0x298   : > { %v2995_v46 = vpop.f32.mrf.mxu1 }
 0x29a   : > { %v2996_v48 = vpop.f32.mrf.mxu1 }
 0x29b   : > { %v2997_v55 = vadd.f32 %v2996_v48, %v2995_v46 }
 0x29c   : > { %v2998_v37 = vpop.f32.mrf.mxu1 }
 0x29e   : > { %v2999_v49 = vpop.f32.mrf.mxu1 }
 0x29f   : > { %v3000_v53 = vadd.f32 %v2999_v49, %v2998_v37 }
 0x2a0   : > { %v3001_v50 = vpop.f32.mrf.mxu1 }
 0x2a2   : > { %v3002_v51 = vpop.f32.mrf.mxu1 }
 0x2a3   : > { %v3003_v61 = vadd.f32 %v3002_v51, %v3001_v50 }
 0x2a4   : > { %v3004_v40 = vpop.f32.mrf.mxu1 }
 0x2a6   : > { %v3005_v52 = vpop.f32.mrf.mxu1 }
 0x2a7   : > { %v3006_v58 = vadd.f32 %v3005_v52, %v3004_v40 }
 0x2b8   : > { %v3309_v54 = vpop.f32.mrf.mxu1 }
 0x2b9   : > { %v992_v56 = vadd.f32 %v3309_v54, %v3000_v53 }
 0x2ba   : > { %v986_v57 = vpop.f32.mrf.mxu1 }
 0x2bb   : > { %1006 = vst [vmem:[#allocation2 + $0x8] sm:$0xff] %v992_v56  ;;  %1010 = vst [vmem:[#allocation3 + $0x8] sm:$0xff] %v992_v56  ;;  %v987_v59 = vadd.f32 %v2997_v55, %v986_v57 }
 0x2bc   : > { %v3312_v60 = vpop.f32.mrf.mxu1 }
 0x2bd   : > { %1005 = vst [vmem:[#allocation2 + $0x10] sm:$0xff] %v987_v59  ;;  %1009 = vst [vmem:[#allocation3] sm:$0xff] %v987_v59  ;;  %v1002_v62 = vadd.f32 %v3312_v60, %v3006_v58 }
 0x2be   : > { %v996_v63 = vpop.f32.mrf.mxu1 }
 0x2bf   : > { %1008 = vst [vmem:[#allocation2 + $0x18] sm:$0xff] %v1002_v62  ;;  %1012 = vst [vmem:[#allocation3 + $0x18] sm:$0xff] %v1002_v62  ;;  %v997_v0 = vadd.f32 %v3003_v61, %v996_v63 }
 0x2c1   : > { %1007 = vst [vmem:[#allocation2] sm:$0xff] %v997_v0  ;;  %1011 = vst [vmem:[#allocation3 + $0x10] sm:$0xff] %v997_v0 }
 0x2c2 PF: > { %v3498_v7 = vld [vmem:[%s4066_s21 + $0x78] sm:$0xff]   ;;  %v3502_v11 = vld [vmem:[%s4066_s21 + $0x70] sm:$0xff]   ;;  %v3506_v14 = vld [vmem:[%s4066_s21 + $0x68] sm:$0xff]   ;;  %vm1057_vm0 = vcmask 1043456   ;;  %vm1117_vm1 = vcmask 1046528   ;;  %vm1027_vm2 = vcmask 1042432  }
 0x2c3   : > { %v3499_v9 = vld [vmem:[%s4066_s21 + $0xf8] sm:$0xff]   ;;  %3027 = vmatprep.subr.bf16.mxu0 %v3498_v7  ;;  %v3503_v12 = vld [vmem:[%s4066_s21 + $0xf0] sm:$0xff]   ;;  %v3507_v15 = vld [vmem:[%s4066_s21 + $0xe8] sm:$0xff]   ;;  %vm1257_vm3 = vsmask.f32 7424  ;;  %vm1293_vm4 = vcmask 1045504  }
 0x2c4   : > { %v3500_v10 = vld [vmem:[%s4066_s21 + $0x38] sm:$0xff]   ;;  %3055 = vmatprep.subr.bf16.mxu1 %v3499_v9  ;;  %v3504_v13 = vld [vmem:[%s4066_s21 + $0x30] sm:$0xff]   ;;  %v3508_v6 = vld [vmem:[%s4066_s21 + $0x28] sm:$0xff]   ;;  %vm1501_vm5 = vsmask.f32 6400  ;;  %vm1087_vm6 = vcmask 1044480  }
 0x2c5   : > { %v3501_v8 = vld [vmem:[%s4066_s21 + $0xb8] sm:$0xff]   ;;  %3028 = vmatpush3.bf16.msra.mxu0 %v3500_v10  ;;  %v3505_v5 = vld [vmem:[%s4066_s21 + $0xb0] sm:$0xff]   ;;  %v3509_v16 = vld [vmem:[%s4066_s21 + $0xa8] sm:$0xff]   ;;  %vm1299_vm7 = vsmask.f32 1280  ;;  %vm1149_vm8 = vcmask 1040384  }
 0x2c6   : > { %3056 = vmatpush3.bf16.msra.mxu1 %v3501_v8  ;;  %3029 = vmatprep.subr.bf16.mxu0 %v3502_v11  ;;  %v3510_v19 = vld [vmem:[%s4066_s21 + $0x60] sm:$0xff]   ;;  %v3514_v22 = vld [vmem:[%s4066_s21 + $0x58] sm:$0xff]   ;;  %v3518_v1 = vld [vmem:[%s4066_s21 + $0x50] sm:$0xff]   ;;  %p2435_p4 = scmp.lt.s32.totalorder %s3923_s11, 0 }
 0x2c7   : > { %3057 = vmatprep.subr.bf16.mxu1 %v3503_v12  ;;  %v3511_v3 = vld [vmem:[%s4066_s21 + $0xe0] sm:$0xff]   ;;  %v3515_v4 = vld [vmem:[%s4066_s21 + $0xd8] sm:$0xff]   ;;  %v3519_v17 = vld [vmem:[%s4066_s21 + $0xd0] sm:$0xff]  }
 0x2c8   : > { %v3512_v21 = vld [vmem:[%s4066_s21 + $0x20] sm:$0xff]   ;;  %v3516_v23 = vld [vmem:[%s4066_s21 + $0x18] sm:$0xff]   ;;  %v3520_v18 = vld [vmem:[%s4066_s21 + $0x10] sm:$0xff]  }
 0x2c9   : > { %3030 = vmatpush3.bf16.msra.mxu0 %v3504_v13  ;;  %v3513_v20 = vld [vmem:[%s4066_s21 + $0xa0] sm:$0xff]   ;;  %v3517_v24 = vld [vmem:[%s4066_s21 + $0x98] sm:$0xff]   ;;  %v3521_v25 = vld [vmem:[%s4066_s21 + $0x90] sm:$0xff]  }
 0x2ca   : > { %3058 = vmatpush3.bf16.msra.mxu1 %v3505_v5  ;;  %3031 = vmatprep.subr.bf16.mxu0 %v3506_v14  ;;  %v3522_v2 = vld [vmem:[%s4066_s21 + $0x48] sm:$0xff]   ;;  %v3526_v29 = vld [vmem:[%s4066_s21 + $0x40] sm:$0xff]   ;;  %v4333_v33 = vld [vmem:[#allocation2 + $0x28] sm:$0xff] }
 0x2cb   : > { %3059 = vmatprep.subr.bf16.mxu1 %v3507_v15  ;;  %v3523_v26 = vld [vmem:[%s4066_s21 + $0xc8] sm:$0xff]   ;;  %v3527_v30 = vld [vmem:[%s4066_s21 + $0xc0] sm:$0xff]   ;;  %v4337_v35 = vld [vmem:[#allocation2 + $0x8] sm:$0xff] }
 0x2cc   : > { %v3524_v27 = vld [vmem:[%s4066_s21 + $0x8] sm:$0xff]   ;;  %v3528_v31 = vld [vmem:[%s4066_s21] sm:$0xff]   ;;  %v4339_v36 = vld [vmem:[#allocation2] sm:$0xff] }
 0x2cd   : > { %3032 = vmatpush3.bf16.msra.mxu0 %v3508_v6  ;;  %v3525_v28 = vld [vmem:[%s4066_s21 + $0x88] sm:$0xff]   ;;  %v3529_v32 = vld [vmem:[%s4066_s21 + $0x80] sm:$0xff]   ;;  %v1051_v42 = vld [vmem:[#allocation9 + $0x30] sm:$0xff] }
 0x2ce   : > { %3060 = vmatpush3.bf16.msra.mxu1 %v3509_v16  ;;  %3033 = vmatprep.subr.bf16.mxu0 %v3510_v19  ;;  %v4335_v34 = vld [vmem:[#allocation2 + $0x10] sm:$0xff]  ;;  %v4341_v38 = vld [vmem:[#allocation2 + $0x18] sm:$0xff]  ;;  %v1052_v44 = vld [vmem:[#allocation9 + $0x38] sm:$0xff]  ;;  %v1061_v47 = vrot.slane %v1051_v42, 4 }
 0x2cf   : > { %3061 = vmatprep.subr.bf16.mxu1 %v3511_v3  ;;  %v1049_v39 = vld [vmem:[#allocation9 + $0x20] sm:$0xff]  ;;  %v1050_v41 = vld [vmem:[#allocation9 + $0x28] sm:$0xff]  ;;  %v1063_v46 = vrot.slane %v1052_v44, 4  ;;  %v1111_v49 = vld [vmem:[#allocation9 + $0x70] sm:$0xff] }
 0x2d0   : > { %v1058_v45 = vrot.slane %v1049_v39, 4  ;;  %v1059_v43 = vrot.slane %v1050_v41, 4  ;;  %v1109_v48 = vld [vmem:[#allocation9 + $0x60] sm:$0xff]  ;;  %v1110_v37 = vld [vmem:[#allocation9 + $0x68] sm:$0xff]  ;;  %v1112_v51 = vld [vmem:[#allocation9 + $0x78] sm:$0xff]  ;;  %v1121_v53 = vrot.slane %v1111_v49, 1 }
 0x2d1   : > { %3034 = vmatpush3.bf16.msra.mxu0 %v3512_v21  ;;  %v1118_v40 = vrot.slane %v1109_v48, 1  ;;  %v1119_v52 = vrot.slane %v1110_v37, 1  ;;  %v1064_v56 = vsel %vm1057_vm0, %v1061_v47, %v1063_v46  ;;  %v1074_v57 = vmul.f32 %v1063_v46, %v4341_v38  ;;  %v1019_v62 = vld [vmem:[#allocation9] sm:$0xff]  ;;  %v1020_v10 = vld [vmem:[#allocation9 + $0x8] sm:$0xff]  ;;  %v3530_v8 = vld [vmem:[%s4066_s21 + $0x178] sm:$0xff]  }
 0x2d2   : > { %3062 = vmatpush3.bf16.msra.mxu1 %v3513_v20  ;;  %3035 = vmatprep.subr.bf16.mxu0 %v3514_v22  ;;  %v1070_v50 = vmul.f32 %v1058_v45, %v4333_v33  ;;  %v1060_v54 = vsel %vm1057_vm0, %v1058_v45, %v1059_v43  ;;  %v1062_v55 = vsel %vm1057_vm0, %v1059_v43, %v1061_v47  ;;  %v1123_v7 = vrot.slane %v1112_v51, 1  ;;  %v1021_v14 = vld [vmem:[#allocation9 + $0x10] sm:$0xff] }
 0x2d3   : > { %3063 = vmatprep.subr.bf16.mxu1 %v3515_v4  ;;  %v1071_v58 = vmul.f32 %v1060_v54, %v4335_v34  ;;  %v1072_v59 = vmul.f32 %v1062_v55, %v4337_v35  ;;  %v1073_v60 = vmul.f32 %v1064_v56, %v4339_v36  ;;  %v1120_v61 = vsel %vm1117_vm1, %v1118_v40, %v1119_v52  ;;  %v4362_v4 = vld [vmem:[#allocation9 + $0x18] sm:$0xff] }
 0x2d4   : > { %v4352_v63 = vpack.c.bf16 %v1074_v57, %v1074_v57  ;;  %v1122_v0 = vsel %vm1117_vm1, %v1119_v52, %v1121_v53  ;;  %v1130_v9 = vmul.f32 %v1118_v40, %v4333_v33  ;;  %v1131_v13 = vmul.f32 %v1120_v61, %v4335_v34  ;;  %v1079_v61 = vld [vmem:[#allocation9 + $0x40] sm:$0xff] }
 0x2d5   : > { %3036 = vmatpush3.bf16.msra.mxu0 %v3516_v23  ;;  %v1075_v11 = vpack.c.bf16 %v1071_v58, %v1070_v50  ;;  %v1076_v12 = vpack.c.bf16 %v1073_v60, %v1072_v59  ;;  %v1132_v5 = vmul.f32 %v1122_v0, %v4337_v35  ;;  %v1124_v6 = vsel %vm1117_vm1, %v1121_v53, %v1123_v7  ;;  %v3532_v23 = vld [vmem:[%s4066_s21 + $0x1f8] sm:$0xff]  }
 0x2d6   : > { %3064 = vmatpush3.bf16.msra.mxu1 %v3517_v24  ;;  %3037 = vmatprep.subr.bf16.mxu0 %v3518_v1  ;;  %v1274_v15 = vshll.u32 %v4352_v63, 16  ;;  %v1134_v16 = vmul.f32 %v1123_v7, %v4341_v38  ;;  %v1028_v19 = vrot.slane %v1019_v62, 5  ;;  %v1133_v1 = vmul.f32 %v1124_v6, %v4339_v36 }
 0x2d7   : > { %3065 = vmatprep.subr.bf16.mxu1 %v3519_v17  ;;  %v1259_v3 = vshrl.u32 %v1075_v11, 16  ;;  %v1261_v21 = vshll.u32 %v1075_v11, 16  ;;  %v1266_v20 = vshll.u32 %v1076_v12, 16  ;;  %v1270_v22 = vshrl.u32 %v1076_v12, 16 }
 0x2d8   : > { %v4365_v24 = vrot.slane %v1274_v15, 1  ;;  %v1135_v17 = vpack.c.bf16 %v1131_v13, %v1130_v9  ;;  %v1040_v43 = vmul.f32 %v1028_v19, %v4333_v33 }
 0x2d9   : > { %3038 = vmatpush3.bf16.msra.mxu0 %v3520_v18  ;;  %v1137_v18 = vpack.c.bf16 %v1134_v16, %v1134_v16 }
 0x2da   : > { %3066 = vmatpush3.bf16.msra.mxu1 %v3521_v25  ;;  %3039 = vmatprep.subr.bf16.mxu0 %v3522_v2  ;;  %v1263_v25 = vrot.slane %v1261_v21, 1  ;;  %v1268_v2 = vrot.slane %v1266_v20, 1 }
 0x2db   : > { %3067 = vmatprep.subr.bf16.mxu1 %v3523_v26  ;;  %v1029_v26 = vrot.slane %v1020_v10, 5  ;;  %v1080_v10 = vld [vmem:[#allocation9 + $0x48] sm:$0xff] }
 0x2dc   : > { %v1272_v39 = vor.u32 %v1270_v22, %v1268_v2  ;;  %v1082_v22 = vld [vmem:[#allocation9 + $0x58] sm:$0xff] }
 0x2dd   : > { %3040 = vmatpush3.bf16.msra.mxu0 %v3524_v27  ;;  %v1031_v27 = vrot.slane %v1021_v14, 5  ;;  %v1030_v41 = vsel %vm1027_vm2, %v1028_v19, %v1029_v26 }
 0x2de   : > { %3068 = vmatpush3.bf16.msra.mxu1 %v3525_v28  ;;  %3041 = vmatprep.subr.bf16.mxu0 %v3526_v29  ;;  %v1136_v28 = vpack.c.bf16 %v1133_v1, %v1132_v5  ;;  %v1294_v29 = vrot.slane %v1135_v17, 2  ;;  %v1041_v47 = vmul.f32 %v1030_v41, %v4335_v34  ;;  %v1277_v48 = vsel %vm1257_vm3, %v1272_v39, %v4365_v24 }
 0x2df   : > { %3069 = vmatprep.subr.bf16.mxu1 %v3527_v30  ;;  %v4368_v30 = vrot.slane %v1137_v18, 2  ;;  %v1032_v42 = vsel %vm1027_vm2, %v1029_v26, %v1031_v27  ;;  %v1528_v40 = vshrl.u32 %v1277_v48, 16  ;;  %v1531_v52 = vshll.u32 %v1277_v48, 16  ;;  %v3531_v48 = vld [vmem:[%s4066_s21 + $0x138] sm:$0xff]  }
 0x2e0   : > { %v1295_v44 = vrot.slane %v1136_v28, 2  ;;  %v1042_v37 = vmul.f32 %v1032_v42, %v4337_v35  ;;  %v1045_v55 = vpack.c.bf16 %v1041_v47, %v1040_v43  ;;  %v1088_v18 = vrot.slane %v1079_v61, 3 }
 0x2e1   : > { %3042 = vmatpush3.bf16.msra.mxu0 %v3528_v31  ;;  %v1033_v31 = vrot.slane %v4362_v4, 5  ;;  %v1530_v59 = vrot.slane %v1528_v40, 1  ;;  %v1533_v60 = vrot.slane %v1531_v52, 2  ;;  %v1089_v26 = vrot.slane %v1080_v10, 3  ;;  %v3535_v40 = vld [vmem:[%s4066_s21 + $0x130] sm:$0xff]  }
 0x2e2   : > { %3070 = vmatpush3.bf16.msra.mxu1 %v3529_v32  ;;  %3083 = vmatprep.subr.bf16.mxu0 %v3530_v8  ;;  %v1264_v32 = vor.u32 %v1263_v25, %v1259_v3  ;;  %v1296_v53 = vsel %vm1293_vm4, %v1294_v29, %v1295_v44  ;;  %v1298_v54 = vsel %vm1293_vm4, %v1295_v44, %v4368_v30  ;;  %v1081_v8 = vld [vmem:[#allocation9 + $0x50] sm:$0xff]  ;;  %v1503_v13 = vshrl.u32 %v1045_v55, 16 }
 0x2e3   : > { %3111 = vmatprep.subr.bf16.mxu1 %v3532_v23  ;;  %v1034_v45 = vsel %vm1027_vm2, %v1031_v27, %v1033_v31  ;;  %v1554_v62 = vshrl.u32 %v1296_v53, 16  ;;  %v1557_v0 = vshll.u32 %v1296_v53, 16  ;;  %v1562_v7 = vshrl.u32 %v1298_v54, 16 }
 0x2e4   : > { %v1269_v46 = vsel %vm1257_vm3, %v1264_v32, %v1268_v2  ;;  %v1043_v49 = vmul.f32 %v1034_v45, %v4339_v36  ;;  %v1565_v9 = vshll.u32 %v1298_v54, 16  ;;  %v4386_v12 = vor.u32 %v1533_v60, %v1530_v59 }
 0x2e5   : > { %v1520_v50 = vshrl.u32 %v1269_v46, 16  ;;  %v1523_v51 = vshll.u32 %v1269_v46, 16  ;;  %v1506_v5 = vshll.u32 %v1045_v55, 16  ;;  %v1556_v14 = vrot.slane %v1554_v62, 1 }
 0x2e6   : > { %v1046_v56 = vpack.c.bf16 %v1043_v49, %v1042_v37  ;;  %v1559_v15 = vrot.slane %v1557_v0, 2  ;;  %v1564_v6 = vrot.slane %v1562_v7, 1  ;;  %v1567_v16 = vrot.slane %v1565_v9, 2  ;;  %v3534_v49 = vld [vmem:[%s4066_s21 + $0x170] sm:$0xff]  }
 0x2e7   : > { %v1522_v57 = vrot.slane %v1520_v50, 1  ;;  %v1525_v58 = vrot.slane %v1523_v51, 2  ;;  %v1505_v3 = vrot.slane %v1503_v13, 1  ;;  %v1508_v21 = vrot.slane %v1506_v5, 2 }
 0x2e8   : > { %v1511_v20 = vshrl.u32 %v1046_v56, 16  ;;  %v1560_v23 = vor.u32 %v1559_v15, %v1556_v14  ;;  %v4390_v1 = vor.u32 %v1567_v16, %v1564_v6  ;;  %v1514_v17 = vshll.u32 %v1046_v56, 16  ;;  %v3538_v56 = vld [vmem:[%s4066_s21 + $0x168] sm:$0xff]  }
 0x2e9   : > { %v1526_v11 = vor.u32 %v1525_v58, %v1522_v57  ;;  %v1509_v25 = vor.u32 %v1508_v21, %v1505_v3  ;;  %v1091_v27 = vrot.slane %v1081_v8, 3  ;;  %v1093_v32 = vrot.slane %v1082_v22, 3  ;;  %v3542_v3 = vld [vmem:[%s4066_s21 + $0x160] sm:$0xff]  }
 0x2ea   : > { %v1513_v2 = vrot.slane %v1511_v20, 1  ;;  %v1569_v28 = vsel %vm1501_vm5, %v1560_v23, %v4390_v1  ;;  %v1516_v29 = vrot.slane %v1514_v17, 2  ;;  %v1100_v39 = vmul.f32 %v1088_v18, %v4333_v33 }
 0x2eb   : > { %v1535_v19 = vsel %vm1501_vm5, %v1526_v11, %v4386_v12  ;;  %2267 = vmatprep.mubr.bf16.mxu1 %v1569_v28  ;;  %v1090_v41 = vsel %vm1087_vm6, %v1088_v18, %v1089_v26  ;;  %v1092_v42 = vsel %vm1087_vm6, %v1089_v26, %v1091_v27  ;;  %v1044_v44 = vmul.f32 %v1033_v31, %v4341_v38  ;;  %v3533_v26 = vld [vmem:[%s4066_s21 + $0x1b8] sm:$0xff]   ;;  %v3543_v28 = vld [vmem:[%s4066_s21 + $0x120] sm:$0xff]  }
 0x2ec   : > { %2218 = vmatprep.mubr.bf16.mxu0 %v1535_v19  ;;  %v1517_v45 = vor.u32 %v1516_v29, %v1513_v2  ;;  %v1094_v43 = vsel %vm1087_vm6, %v1091_v27, %v1093_v32  ;;  %v1101_v47 = vmul.f32 %v1090_v41, %v4335_v34  ;;  %v1102_v46 = vmul.f32 %v1092_v42, %v4337_v35  ;;  %v3536_v27 = vld [vmem:[%s4066_s21 + $0x1f0] sm:$0xff]  }
 0x2ed   : > { %v1103_v33 = vmul.f32 %v1094_v43, %v4339_v36  ;;  %v1104_v37 = vmul.f32 %v1093_v32, %v4341_v38  ;;  %v1278_v50 = vshrl.u32 %v4352_v63, 16  ;;  %v1047_v51 = vpack.c.bf16 %v1044_v44, %v1044_v44  ;;  %v3546_v43 = vld [vmem:[%s4066_s21 + $0x158] sm:$0xff]  }
 0x2ee   : > { %v1518_v4 = vsel %vm1501_vm5, %v1509_v25, %v1517_v45  ;;  %v1105_v31 = vpack.c.bf16 %v1101_v47, %v1100_v39  ;;  %v1683_v52 = vshrl.u32 %v4368_v30, 16  ;;  %v1686_v53 = vshll.u32 %v4368_v30, 16  ;;  %v3539_v30 = vld [vmem:[%s4066_s21 + $0x128] sm:$0xff]  }
 0x2ef   : > { %2219 = vmatmul.mubr.bf16.vlgmr.msra.gmra.mxu0 %v1518_v4  ;;  %v1106_v54 = vpack.c.bf16 %v1103_v33, %v1102_v46  ;;  %v1107_v55 = vpack.c.bf16 %v1104_v37, %v1104_v37  ;;  %v1280_v57 = vor.u32 %v1278_v50, %v4365_v24  ;;  %v1656_v58 = vshrl.u32 %v1047_v51, 16  ;;  %v3540_v33 = vld [vmem:[%s4066_s21 + $0x1e8] sm:$0xff]   ;;  %v3547_v50 = vld [vmem:[%s4066_s21 + $0x118] sm:$0xff]  }
 0x2f0   : > { %v1285_v59 = vrot.slane %v1105_v31, 1  ;;  %3084 = vmatpush3.bf16.msra.mxu0 %v3531_v48  ;;  %v1685_v63 = vrot.slane %v1683_v52, 1  ;;  %v1688_v60 = vrot.slane %v1686_v53, 2  ;;  %v1659_v61 = vshll.u32 %v1047_v51, 16  ;;  %v3537_v48 = vld [vmem:[%s4066_s21 + $0x1b0] sm:$0xff]   ;;  %v3541_v52 = vld [vmem:[%s4066_s21 + $0x1a8] sm:$0xff]  }
 0x2f1   : > { %v1286_v62 = vrot.slane %v1106_v54, 1  ;;  %v1288_v0 = vrot.slane %v1107_v55, 1  ;;  %3085 = vmatprep.subr.bf16.mxu0 %v3534_v49  ;;  %v1665_v7 = vshrl.u32 %v1280_v57, 16  ;;  %v1668_v9 = vshll.u32 %v1280_v57, 16  ;;  %v3550_v31 = vld [vmem:[%s4066_s21 + $0x150] sm:$0xff]   ;;  %v1141_v54 = vld [vmem:[#allocation9 + $0xa0] sm:$0xff] }
 0x2f2   : > { %v1658_v10 = vrot.slane %v1656_v58, 1  ;;  %v1661_v8 = vrot.slane %v1659_v61, 2  ;;  %v1138_v11 = vpack.c.bf16 %v4337_v35, %v4335_v34  ;;  %v1689_v20 = vor.u32 %v1688_v60, %v1685_v63  ;;  %v3551_v53 = vld [vmem:[%s4066_s21 + $0x110] sm:$0xff]   ;;  %v1142_v55 = vld [vmem:[#allocation9 + $0xa8] sm:$0xff]  ;;  %v3544_v57 = vld [vmem:[%s4066_s21 + $0x1e0] sm:$0xff]  }
 0x2f3   : > { %v1287_v24 = vsel %vm1117_vm1, %v1285_v59, %v1286_v62  ;;  %v1289_v13 = vsel %vm1117_vm1, %v1286_v62, %v1288_v0  ;;  %v1667_v5 = vrot.slane %v1665_v7, 1  ;;  %v1670_v14 = vrot.slane %v1668_v9, 2  ;;  %v1143_v58 = vld [vmem:[#allocation9 + $0xb0] sm:$0xff]  ;;  %v4439_v59 = vld [vmem:[#allocation9 + $0xb8] sm:$0xff] }
 0x2f4   : > { %v1537_v15 = vshrl.u32 %v1287_v24, 16  ;;  %v1540_v6 = vshll.u32 %v1287_v24, 16  ;;  %v1545_v16 = vshrl.u32 %v1289_v13, 16  ;;  %v1548_v19 = vshll.u32 %v1289_v13, 16  ;;  %3086 = vmatpush3.bf16.msra.mxu0 %v3535_v40 }
 0x2f5   : > { %3087 = vmatprep.subr.bf16.mxu0 %v3538_v56  ;;  %v1671_v21 = vor.u32 %v1670_v14, %v1667_v5  ;;  %v1662_v22 = vor.u32 %v1661_v8, %v1658_v10  ;;  %v1674_v23 = vshrl.u32 %v1288_v0, 16  ;;  %v1677_v41 = vshll.u32 %v1288_v0, 16  ;;  %v3554_v0 = vld [vmem:[%s4066_s21 + $0x148] sm:$0xff]  }
 0x2f6   : > { %v1539_v17 = vrot.slane %v1537_v15, 1  ;;  %v1542_v18 = vrot.slane %v1540_v6, 2  ;;  %v1547_v25 = vrot.slane %v1545_v16, 1  ;;  %v1550_v2 = vrot.slane %v1548_v19, 2  ;;  %v1200_v6 = vld [vmem:[#allocation9 + $0xe0] sm:$0xff] }
 0x2f7   : > { %v1672_v29 = vsel %vm1501_vm5, %v4386_v12, %v1671_v21  ;;  %v1663_v32 = vsel %vm1501_vm5, %v1517_v45, %v1662_v22  ;;  %v1676_v39 = vrot.slane %v1674_v23, 1  ;;  %v1679_v47 = vrot.slane %v1677_v41, 2  ;;  %v1202_v22 = vld [vmem:[#allocation9 + $0xf0] sm:$0xff]  ;;  %v1203_v23 = vld [vmem:[#allocation9 + $0xf8] sm:$0xff] }
 0x2f8   : > { %v1543_v42 = vor.u32 %v1542_v18, %v1539_v17  ;;  %v1551_v44 = vor.u32 %v1550_v2, %v1547_v25  ;;  %3088 = vmatpush3.bf16.msra.mxu0 %v3539_v30  ;;  %2226 = vmatprep.mubr.bf16.mxu0 %v1672_v29  ;;  %v1139_v12 = vpack.c.bf16 %v4341_v38, %v4339_v36  ;;  %v1301_v45 = vshrl.u32 %v1138_v11, 16  ;;  %v3545_v17 = vld [vmem:[%s4066_s21 + $0x1a0] sm:$0xff]   ;;  %v3555_v18 = vld [vmem:[%s4066_s21 + $0x108] sm:$0xff]  }
 0x2f9   : > { %3089 = vmatprep.subr.bf16.mxu0 %v3542_v3  ;;  %2227 = vmatmul.mubr.bf16.gmra.mxu0 %v1663_v32  ;;  %v1690_v37 = vsel %vm1501_vm5, %v4390_v1, %v1689_v20  ;;  %v1304_v49 = vshll.u32 %v1138_v11, 16  ;;  %v1680_v51 = vor.u32 %v1679_v47, %v1676_v39  ;;  %v1150_v63 = vrot.slane %v1141_v54, 7  ;;  %v1201_v20 = vld [vmem:[#allocation9 + $0xe8] sm:$0xff]  ;;  %v3558_v29 = vld [vmem:[%s4066_s21 + $0x140] sm:$0xff]  }
 0x2fa   : > { %v1552_v46 = vsel %vm1501_vm5, %v1543_v42, %v1551_v44  ;;  %v1303_v4 = vrot.slane %v1301_v45, 6  ;;  %v1309_v56 = vshrl.u32 %v1139_v12, 16  ;;  %v1312_v1 = vshll.u32 %v1139_v12, 16  ;;  %v4466_v45 = vld [vmem:[#allocation9 + $0xc0] sm:$0xff] }
 0x2fb   : > { %2268 = vmatmul.mubr.bf16.vlgmr.msra.gmra.mxu1 %v1552_v46  ;;  %v1306_v40 = vrot.slane %v1304_v49, 7  ;;  %v1151_v60 = vrot.slane %v1142_v55, 7  ;;  %v1681_v62 = vsel %vm1501_vm5, %v1551_v44, %v1680_v51  ;;  %v1153_v7 = vrot.slane %v1143_v58, 7  ;;  %v3549_v44 = vld [vmem:[%s4066_s21 + $0x198] sm:$0xff]  }
 0x2fc   : > { %3112 = vmatpush3.bf16.msra.mxu1 %v3533_v26  ;;  %3090 = vmatpush3.bf16.msra.mxu0 %v3543_v28  ;;  %v1155_v9 = vrot.slane %v4439_v59, 7  ;;  %v1311_v30 = vrot.slane %v1309_v56, 6  ;;  %v1162_v8 = vmul.f32 %v1150_v63, %v4335_v34  ;;  %v1314_v11 = vrot.slane %v1312_v1, 7  ;;  %v3548_v28 = vld [vmem:[%s4066_s21 + $0x1d8] sm:$0xff]  }
 0x2fd   : > { %3113 = vmatprep.subr.bf16.mxu1 %v3536_v27  ;;  %3091 = vmatprep.subr.bf16.mxu0 %v3546_v43  ;;  %v1307_v61 = vor.u32 %v1306_v40, %v1303_v4  ;;  %v1152_v10 = vsel %vm1149_vm8, %v1150_v63, %v1151_v60  ;;  %v1154_v13 = vsel %vm1149_vm8, %v1151_v60, %v1153_v7  ;;  %v1208_v26 = vrot.slane %v1200_v6, 4  ;;  %v3559_v43 = vld [vmem:[%s4066_s21 + $0x100] sm:$0xff]   ;;  %v4472_v49 = vld [vmem:[%s4066_s21 + $0x238] sm:$0xff]   ;;  %v3553_v63 = vld [vmem:[%s4066_s21 + $0x190] sm:$0xff]  }
 0x2fe   : > { %2275 = vmatprep.mubr.bf16.mxu1 %v1690_v37  ;;  %v1156_v5 = vsel %vm1149_vm8, %v1153_v7, %v1155_v9  ;;  %v1163_v14 = vmul.f32 %v1152_v10, %v4337_v35  ;;  %v1164_v16 = vmul.f32 %v1154_v13, %v4339_v36  ;;  %v4453_v3 = vor.u32 %v1314_v11, %v1311_v30  ;;  %v3556_v7 = vld [vmem:[%s4066_s21 + $0x1c8] sm:$0xff]  }
 0x2ff   : > { %v1571_v24 = vshrl.u32 %v1307_v61, 16  ;;  %v1574_v15 = vshll.u32 %v1307_v61, 16  ;;  %v1165_v19 = vmul.f32 %v1156_v5, %v4341_v38  ;;  %v1209_v27 = vrot.slane %v1201_v20, 4 }
 0x300   : > { %3114 = vmatpush3.bf16.msra.mxu1 %v3537_v48  ;;  %3092 = vmatpush3.bf16.msra.mxu0 %v3547_v50  ;;  %v1167_v25 = vpack.c.bf16 %v1163_v14, %v1162_v8  ;;  %v1316_v39 = vsel %vm1299_vm7, %v1307_v61, %v4453_v3  ;;  %v1211_v41 = vrot.slane %v1202_v22, 4  ;;  %v1213_v42 = vrot.slane %v1203_v23, 4  ;;  %v4474_v50 = vld [vmem:[#allocation2 + $0x20] sm:$0xff] }
 0x301   : > { %3115 = vmatprep.subr.bf16.mxu1 %v3540_v33  ;;  %3093 = vmatprep.subr.bf16.mxu0 %v3550_v31  ;;  %v4455_v21 = vrot.slane %v1571_v24, 1  ;;  %v1576_v2 = vrot.slane %v1574_v15, 2  ;;  %v1168_v32 = vpack.c.bf16 %v1165_v19, %v1164_v16  ;;  %v1579_v48 = vshrl.u32 %v1316_v39, 16  ;;  %v3552_v33 = vld [vmem:[%s4066_s21 + $0x1d0] sm:$0xff]  }
 0x302   : > { %v1321_v47 = vrot.slane %v1167_v25, 7  ;;  %v1582_v12 = vshll.u32 %v1316_v39, 16  ;;  %v1210_v51 = vsel %vm1057_vm0, %v1208_v26, %v1209_v27  ;;  %v1212_v4 = vsel %vm1057_vm0, %v1209_v27, %v1211_v41  ;;  %v1173_v24 = vld [vmem:[#allocation9 + $0xd0] sm:$0xff] }
 0x303   : > { %2276 = vmatmul.mubr.bf16.gmra.mxu1 %v1681_v62  ;;  %v1577_v46 = vor.u32 %v1576_v2, %v4455_v21  ;;  %v4469_v37 = vrot.slane %v1168_v32, 7  ;;  %v1214_v31 = vsel %vm1057_vm0, %v1211_v41, %v1213_v42  ;;  %v1220_v56 = vmul.f32 %v1208_v26, %v4335_v34  ;;  %v4496_v21 = vld [vmem:[#allocation9 + $0xd8] sm:$0xff] }
 0x304   : > { %3116 = vmatpush3.bf16.msra.mxu1 %v3541_v52  ;;  %3094 = vmatpush3.bf16.msra.mxu0 %v3551_v53  ;;  %v1588_v40 = vshrl.u32 %v1321_v47, 16  ;;  %v1591_v52 = vshll.u32 %v1321_v47, 16  ;;  %v1581_v53 = vrot.slane %v1579_v48, 1  ;;  %v1584_v54 = vrot.slane %v1582_v12, 2 }
 0x305   : > { %3117 = vmatprep.subr.bf16.mxu1 %v3544_v57  ;;  %3095 = vmatprep.subr.bf16.mxu0 %v3554_v0  ;;  %v1323_v55 = vsel %vm1149_vm8, %v1321_v47, %v4469_v37  ;;  %v1221_v1 = vmul.f32 %v1210_v51, %v4337_v35  ;;  %v1172_v57 = vld [vmem:[#allocation9 + $0xc8] sm:$0xff]  ;;  %v1179_v58 = vrot.slane %v4466_v45, 5  ;;  %v1222_v10 = vmul.f32 %v1212_v4, %v4339_v36 }
 0x306   : > { %v1590_v60 = vrot.slane %v1588_v40, 1  ;;  %v1593_v61 = vrot.slane %v1591_v52, 2  ;;  %v1596_v62 = vshrl.u32 %v1323_v55, 16  ;;  %v1599_v0 = vshll.u32 %v1323_v55, 16 }
 0x307   : > { %v4486_v30 = vor.u32 %v1584_v54, %v1581_v53  ;;  %v1223_v8 = vmul.f32 %v1214_v31, %v4341_v38  ;;  %v1224_v11 = vmul.f32 %v1213_v42, %v4474_v50  ;;  %v1225_v15 = vpack.c.bf16 %v1221_v1, %v1220_v56  ;;  %v3563_v42 = vld [vmem:[%s4066_s21 + $0x230] sm:$0xff]   ;;  %v3564_v54 = vld [vmem:[%s4066_s21 + $0x228] sm:$0xff]  }
 0x308   : > { %3118 = vmatpush3.bf16.msra.mxu1 %v3545_v17  ;;  %3096 = vmatpush3.bf16.msra.mxu0 %v3555_v18  ;;  %v1594_v13 = vor.u32 %v1593_v61, %v1590_v60  ;;  %v1598_v5 = vrot.slane %v1596_v62, 1  ;;  %v1601_v14 = vrot.slane %v1599_v0, 2  ;;  %v1180_v20 = vrot.slane %v1172_v57, 5 }
 0x309   : > { %3119 = vmatprep.subr.bf16.mxu1 %v3548_v28  ;;  %3097 = vmatprep.subr.bf16.mxu0 %v3558_v29  ;;  %v1586_v6 = vsel %vm1501_vm5, %v1577_v46, %v4486_v30  ;;  %v1226_v16 = vpack.c.bf16 %v1223_v8, %v1222_v10  ;;  %v4494_v19 = vpack.c.bf16 %v1224_v11, %v1224_v11  ;;  %v1327_v23 = vshrl.u32 %v1225_v15, 16  ;;  %v3557_v28 = vld [vmem:[%s4066_s21 + $0x188] sm:$0xff]   ;;  %v3565_v8 = vld [vmem:[%s4066_s21 + $0x220] sm:$0xff]  }
 0x30a   : > { %v4498_v22 = vor.u32 %v1601_v14, %v1598_v5  ;;  %v1329_v17 = vshll.u32 %v1225_v15, 16  ;;  %v1182_v18 = vrot.slane %v1173_v24, 5  ;;  %v1181_v27 = vsel %vm1027_vm2, %v1179_v58, %v1180_v20 }
 0x30b   : > { %v1334_v25 = vshll.u32 %v1226_v16, 16  ;;  %v1338_v2 = vshrl.u32 %v1226_v16, 16  ;;  %v1342_v26 = vshll.u32 %v4494_v19, 16  ;;  %v1184_v41 = vrot.slane %v4496_v21, 5 }
 0x30c   : > { %3120 = vmatpush3.bf16.msra.mxu1 %v3549_v44  ;;  %3098 = vmatpush3.bf16.msra.mxu0 %v3559_v43  ;;  %v1603_v29 = vsel %vm1501_vm5, %v1594_v13, %v4498_v22  ;;  %v1331_v32 = vrot.slane %v1329_v17, 1  ;;  %v1183_v39 = vsel %vm1027_vm2, %v1180_v20, %v1182_v18  ;;  %v3560_v44 = vld [vmem:[%s4066_s21 + $0x1c0] sm:$0xff]   ;;  %v1191_v46 = vmul.f32 %v1179_v58, %v4335_v34 }
 0x30d   : > { %3121 = vmatprep.subr.bf16.mxu1 %v3552_v33  ;;  %3313 = vmatprep.subr.bf16.mxu0 %v4472_v49  ;;  %v1336_v43 = vrot.slane %v1334_v25, 1  ;;  %v1344_v47 = vrot.slane %v1342_v26, 1  ;;  %v1192_v48 = vmul.f32 %v1181_v27, %v4337_v35  ;;  %v1185_v45 = vsel %vm1027_vm2, %v1182_v18, %v1184_v41  ;;  %v3561_v35 = vld [vmem:[%s4066_s21 + $0x180] sm:$0xff]   ;;  %v3566_v27 = vld [vmem:[%s4066_s21 + $0x218] sm:$0xff]  }
 0x30e   : > { %2316 = vmatprep.mubr.bf16.mxu0 %v1603_v29  ;;  %v1332_v12 = vor.u32 %v1331_v32, %v1327_v23  ;;  %v1193_v33 = vmul.f32 %v1183_v39, %v4339_v36  ;;  %v1166_v51 = vmul.f32 %v1155_v9, %v4474_v50  ;;  %v1194_v31 = vmul.f32 %v1185_v45, %v4341_v38  ;;  %v1229_v17 = vld [vmem:[#allocation9 + $0x100] sm:$0xff] }
 0x30f   : > { %2317 = vmatmul.mubr.bf16.vlgmr.msra.gmra.mxu0 %v1586_v6  ;;  %v1340_v4 = vor.u32 %v1338_v2, %v1336_v43  ;;  %v1196_v40 = vpack.c.bf16 %v1192_v48, %v1191_v46  ;;  %v1692_v34 = vshrl.u32 %v4453_v3, 16  ;;  %v1695_v36 = vshll.u32 %v4453_v3, 16 }
 0x310   : > { %3122 = vmatpush3.bf16.msra.mxu1 %v3553_v63  ;;  %3314 = vmatpush3.bf16.msra.mxu0 %v4472_v49  ;;  %v1337_v52 = vsel %vm1257_vm3, %v1332_v12, %v1336_v43  ;;  %v1169_v53 = vpack.c.bf16 %v1166_v51, %v1166_v51  ;;  %v1346_v59 = vshrl.u32 %v4494_v19, 16  ;;  %v1197_v38 = vpack.c.bf16 %v1194_v31, %v1193_v33 }
 0x311   : > { %3123 = vmatprep.subr.bf16.mxu1 %v3556_v7  ;;  %3315 = vmatprep.subr.bf16.mxu0 %v3563_v42  ;;  %v1345_v9 = vsel %vm1257_vm3, %v1340_v4, %v1344_v47  ;;  %v1622_v49 = vshrl.u32 %v1337_v52, 16  ;;  %v1625_v55 = vshll.u32 %v1337_v52, 16  ;;  %v1605_v57 = vshrl.u32 %v1196_v40, 16 }
 0x312   : > { %v1630_v56 = vshrl.u32 %v1345_v9, 16  ;;  %v1633_v1 = vshll.u32 %v1345_v9, 16  ;;  %v1608_v58 = vshll.u32 %v1196_v40, 16  ;;  %v1613_v61 = vshrl.u32 %v1197_v38, 16 }
 0x313   : > { %v1624_v63 = vrot.slane %v1622_v49, 1  ;;  %v1627_v60 = vrot.slane %v1625_v55, 2  ;;  %v1616_v62 = vshll.u32 %v1197_v38, 16  ;;  %v1607_v7 = vrot.slane %v1605_v57, 1  ;;  %v3568_v57 = vld [vmem:[%s4066_s21 + $0x208] sm:$0xff]  }
 0x314   : > { %3124 = vmatpush3.bf16.msra.mxu1 %v3557_v28  ;;  %3316 = vmatpush3.bf16.msra.mxu0 %v3563_v42  ;;  %v1632_v3 = vrot.slane %v1630_v56, 1  ;;  %v1635_v0 = vrot.slane %v1633_v1, 2  ;;  %v1610_v10 = vrot.slane %v1608_v58, 2  ;;  %v1615_v24 = vrot.slane %v1613_v61, 1  ;;  %v1230_v42 = vld [vmem:[#allocation9 + $0x108] sm:$0xff]  ;;  %v3571_v56 = vld [vmem:[#allocation2 + $0x8] sm:$0xff] }
 0x315   : > { %3125 = vmatprep.subr.bf16.mxu1 %v3560_v44  ;;  %3317 = vmatprep.subr.bf16.mxu0 %v3564_v54  ;;  %v1628_v11 = vor.u32 %v1627_v60, %v1624_v63  ;;  %v1618_v13 = vrot.slane %v1616_v62, 2  ;;  %v1324_v5 = vrot.slane %v1169_v53, 7  ;;  %v1694_v6 = vrot.slane %v1692_v34, 1  ;;  %v1232_v44 = vld [vmem:[#allocation9 + $0x118] sm:$0xff]  ;;  %v3567_v53 = vld [vmem:[%s4066_s21 + $0x210] sm:$0xff]  }
 0x316   : > { %v1636_v14 = vor.u32 %v1635_v0, %v1632_v3  ;;  %v1611_v15 = vor.u32 %v1610_v10, %v1607_v7  ;;  %v1697_v16 = vrot.slane %v1695_v36, 2  ;;  %v1348_v20 = vor.u32 %v1346_v59, %v1344_v47  ;;  %v3570_v36 = vld [vmem:[#allocation2 + $0x10] sm:$0xff]  ;;  %v3572_v58 = vld [vmem:[#allocation2] sm:$0xff] }
 0x317   : > { %v1619_v19 = vor.u32 %v1618_v13, %v1615_v24  ;;  %v1325_v21 = vsel %vm1149_vm8, %v4469_v37, %v1324_v5  ;;  %v1195_v23 = vmul.f32 %v1184_v41, %v4474_v50  ;;  %v1231_v37 = vld [vmem:[#allocation9 + $0x110] sm:$0xff]  ;;  %v1237_v46 = vrot.slane %v1229_v17, 3 }
 0x318   : > { %3126 = vmatpush3.bf16.msra.mxu1 %v3561_v35  ;;  %3318 = vmatpush3.bf16.msra.mxu0 %v3564_v54  ;;  %v1637_v18 = vsel %vm1501_vm5, %v1628_v11, %v1636_v14  ;;  %v1701_v25 = vshrl.u32 %v1325_v21, 16  ;;  %v1704_v2 = vshll.u32 %v1325_v21, 16  ;;  %v1698_v26 = vor.u32 %v1697_v16, %v1694_v6 }
 0x319   : > { %3319 = vmatprep.subr.bf16.mxu0 %v3565_v8  ;;  %2365 = vmatprep.mubr.bf16.mxu1 %v1637_v18  ;;  %v1620_v28 = vsel %vm1501_vm5, %v1611_v15, %v1619_v19  ;;  %v1719_v29 = vshrl.u32 %v1348_v20, 16  ;;  %v1722_v32 = vshll.u32 %v1348_v20, 16  ;;  %v1198_v39 = vpack.c.bf16 %v1195_v23, %v1195_v23 }
 0x31a   : > { %v1703_v43 = vrot.slane %v1701_v25, 1  ;;  %v1706_v41 = vrot.slane %v1704_v2, 2  ;;  %v1699_v47 = vsel %vm1501_vm5, %v4486_v30, %v1698_v26  ;;  %v1238_v4 = vrot.slane %v1230_v42, 3 }
 0x31b   : > { %2366 = vmatmul.mubr.bf16.vlgmr.msra.gmra.mxu1 %v1620_v28  ;;  %v1721_v48 = vrot.slane %v1719_v29, 1  ;;  %v1724_v12 = vrot.slane %v1722_v32, 2  ;;  %v1710_v45 = vshrl.u32 %v1198_v39, 16  ;;  %v1713_v33 = vshll.u32 %v1198_v39, 16 }
 0x31c   : > { %3320 = vmatpush3.bf16.msra.mxu0 %v3565_v8  ;;  %v1707_v51 = vor.u32 %v1706_v41, %v1703_v43  ;;  %v1240_v31 = vrot.slane %v1231_v37, 3  ;;  %v1242_v40 = vrot.slane %v1232_v44, 3  ;;  %v1249_v54 = vmul.f32 %v3570_v36, %v1237_v46  ;;  %v3569_v8 = vld [vmem:[%s4066_s21 + $0x200] sm:$0xff]   ;;  %s2436_s21 = ssub.s32 0, %s3923_s11 }
 0x31d   : > { %3321 = vmatprep.subr.bf16.mxu0 %v3566_v27  ;;  %v1725_v34 = vor.u32 %v1724_v12, %v1721_v48  ;;  %v1712_v35 = vrot.slane %v1710_v45, 1  ;;  %v1715_v52 = vrot.slane %v1713_v33, 2  ;;  %v1239_v59 = vsel %vm1087_vm6, %v1237_v46, %v1238_v4  ;;  %s2888_s22 = smin.u32 %s3923_s11, %s2436_s21 }
 0x31e   : > { %v1708_v30 = vsel %vm1501_vm5, %v4498_v22, %v1707_v51  ;;  %v1241_v9 = vsel %vm1087_vm6, %v1238_v4, %v1240_v31  ;;  %v1243_v49 = vsel %vm1087_vm6, %v1240_v31, %v1242_v40  ;;  %v1250_v1 = vmul.f32 %v3571_v56, %v1239_v59  ;;  %v3573_v22 = vld [vmem:[#allocation2 + $0x18] sm:$0xff]  ;;  %s2438_s23 = sand.u32 1, %s2888_s22  }
 0x31f   : > { %2324 = vmatprep.mubr.bf16.mxu0 %v1708_v30  ;;  %v1726_v55 = vsel %vm1501_vm5, %v1636_v14, %v1725_v34  ;;  %v1716_v38 = vor.u32 %v1715_v52, %v1712_v35  ;;  %v1251_v63 = vmul.f32 %v3572_v58, %v1241_v9  ;;  %v1252_v60 = vmul.f32 %v3573_v22, %v1243_v49  ;;  %s2439_s15 = ssub.s32 0, %s2438_s23 }
 0x320   : > { %3322 = vmatpush3.bf16.msra.mxu0 %v3566_v27  ;;  %2373 = vmatprep.mubr.bf16.mxu1 %v1726_v55  ;;  %v1253_v61 = vmul.f32 %v1242_v40, %v4474_v50  ;;  %v1254_v3 = vpack.c.bf16 %v1250_v1, %v1249_v54  ;;  %s4618_s15 = smov (!%p2435_p4, %s2439_s15), %s2438_s23 }
 0x321   : > { %2325 = vmatmul.mubr.bf16.gmra.mxu0 %v1699_v47  ;;  %v1717_v62 = vsel %vm1501_vm5, %v1619_v19, %v1716_v38  ;;  %3323 = vmatprep.subr.bf16.mxu0 %v3567_v53  ;;  %v1255_v0 = vpack.c.bf16 %v1252_v60, %v1251_v63  ;;  %p2890_p9 = scmp.lt.s32.totalorder %s4618_s15, 0  ;;  %s2445_s10 = sadd.s32 2, %s4618_s15 }
 0x322   : > { %v1256_v7 = vpack.c.bf16 %v1253_v61, %v1253_v61  ;;  %v1352_v10 = vrot.slane %v1254_v3, 1 }
 0x323   : > { %2374 = vmatmul.mubr.bf16.gmra.mxu1 %v1717_v62  ;;  %v1353_v11 = vrot.slane %v1255_v0, 1  ;;  %s4620_s10 = smov (!%p2890_p9, %s2445_s10), %s4618_s15 }
 0x324   : > { %3324 = vmatpush3.bf16.msra.mxu0 %v3567_v53  ;;  %v1355_v24 = vrot.slane %v1256_v7, 1  ;;  %s2447_s24 = scvt.s32.f32 %s4620_s10  ;;  %p2891_p10 = scmp.ne.s32.totalorder %s4620_s10, 1 }
 0x325   : > { %3325 = vmatprep.subr.bf16.mxu0 %v3568_v57  ;;  %v1354_v13 = vsel %vm1117_vm1, %v1352_v10, %v1353_v11 }
 0x326   : > { %v1356_v5 = vsel %vm1117_vm1, %v1353_v11, %v1355_v24  ;;  %v1728_v14 = vshrl.u32 %v1355_v24, 16  ;;  %v1731_v15 = vshll.u32 %v1355_v24, 16  ;;  %v1639_v50 = vshrl.u32 %v1354_v13, 16 }
 0x327   : > { %v1642_v6 = vshll.u32 %v1354_v13, 16  ;;  %v1647_v16 = vshrl.u32 %v1356_v5, 16  ;;  %v1650_v19 = vshll.u32 %v1356_v5, 16 }
 0x328   : > { %3326 = vmatpush3.bf16.msra.mxu0 %v3568_v57  ;;  %v1730_v21 = vrot.slane %v1728_v14, 1  ;;  %v1733_v20 = vrot.slane %v1731_v15, 2  ;;  %v1641_v23 = vrot.slane %v1639_v50, 1  ;;  %v2452_v14 = vstv %s2447_s24 }
 0x329   : > { %3327 = vmatprep.subr.bf16.mxu0 %v3569_v8  ;;  %v1644_v17 = vrot.slane %v1642_v6, 2  ;;  %v1649_v18 = vrot.slane %v1647_v16, 1  ;;  %v1652_v25 = vrot.slane %v1650_v19, 2  ;;  %v2450_v19 = vld [vmem:[#allocation3 + $0x10] sm:$0xff] }
 0x32a   : > { %v1734_v2 = vor.u32 %v1733_v20, %v1730_v21 }
 0x32b   : > { %v1645_v26 = vor.u32 %v1644_v17, %v1641_v23  ;;  %v1653_v27 = vor.u32 %v1652_v25, %v1649_v18  ;;  %v2455_v25 = vmul.f32 %v2452_v14, %v2450_v19 }
 0x32c   : > { %3328 = vmatpush3.bf16.msra.mxu0 %v3569_v8 }
 0x32d   : > { %v1654_v28 = vsel %vm1501_vm5, %v1645_v26, %v1653_v27  ;;  %v1735_v29 = vsel %vm1501_vm5, %v1653_v27, %v1734_v2  ;;  %v2448_v2 = vld [vmem:[#allocation3] sm:$0xff] }
 0x32e   : > { %3329 = vmatprep.mubr.bf16.mxu0 %v1654_v28 }
 0x32f   : > { %3330 = vmatmul.mubr.bf16.vlgmr.msra.gmra.mxu0 %v1735_v29 }
 0x3af   : > { %v3043_v32 = vpop.f32.mrf.mxu0 }
 0x3b1   : > { %v3044_v39 = vpop.f32.mrf.mxu0 }
 0x3b2   : > { %v3045_v57 = vadd.f32 %v3044_v39, %v3043_v32  ;;  %v2451_v32 = vld [vmem:[#allocation3 + $0x18] sm:$0xff] }
 0x3b3   : > { %v3046_v42 = vpop.f32.mrf.mxu0 }
 0x3b5   : > { %v3047_v44 = vpop.f32.mrf.mxu0 }
 0x3b6   : > { %v3048_v10 = vadd.f32 %v3047_v44, %v3046_v42  ;;  %v2453_v44 = vmul.f32 %v2452_v14, %v2448_v2 }
 0x3b9   : > { %v3049_v41 = vpop.f32.mrf.mxu0 }
 0x3bb   : > { %v3071_v37 = vpop.f32.mrf.mxu1  ;;  %v3050_v46 = vpop.f32.mrf.mxu0 }
 0x3bc   : > { %v3051_v55 = vadd.f32 %v3050_v46, %v3049_v41  ;;  %v2449_v46 = vld [vmem:[#allocation3 + $0x8] sm:$0xff] }
 0x3bd   : > { %v3072_v43 = vpop.f32.mrf.mxu1  ;;  %v3052_v12 = vpop.f32.mrf.mxu0 }
 0x3be   : > { %v3073_v58 = vadd.f32 %v3072_v43, %v3071_v37 }
 0x3bf   : > { %v3074_v47 = vpop.f32.mrf.mxu1  ;;  %v3053_v33 = vpop.f32.mrf.mxu0 }
 0x3c0   : > { %v3054_v62 = vadd.f32 %v3053_v33, %v3052_v12  ;;  %v2270_v7 = vadd.f32 %v3073_v58, %v3045_v57 }
 0x3c1   : > { %v3075_v48 = vpop.f32.mrf.mxu1 }
 0x3c2   : > { %v3076_v8 = vadd.f32 %v3075_v48, %v3074_v47  ;;  %v2456_v47 = vmul.f32 %v2452_v14, %v2451_v32 }
 0x3c3   : > { %v3077_v45 = vpop.f32.mrf.mxu1 }
 0x3c4   : > { %v2273_v21 = vadd.f32 %v3076_v8, %v3048_v10 }
 0x3c5   : > { %v3078_v51 = vpop.f32.mrf.mxu1 }
 0x3c6   : > { %v3079_v38 = vadd.f32 %v3078_v51, %v3077_v45 }
 0x3c7   : > { %v3080_v31 = vpop.f32.mrf.mxu1 }
 0x3c8   : > { %v2278_v61 = vadd.f32 %v3079_v38, %v3051_v55 }
 0x3c9   : > { %v3081_v34 = vpop.f32.mrf.mxu1 }
 0x3ca   : > { %v3082_v3 = vadd.f32 %v3081_v34, %v3080_v31  ;;  %v2454_v34 = vmul.f32 %v2452_v14, %v2449_v46 }
 0x3cc   : > { %v2281_v15 = vadd.f32 %v3082_v3, %v3054_v62 }
 0x3cf   : > { %v3099_v4 = vpop.f32.mrf.mxu0 }
 0x3d1   : > { %v3100_v40 = vpop.f32.mrf.mxu0 }
 0x3d2   : > { %v3101_v0 = vadd.f32 %v3100_v40, %v3099_v4 }
 0x3d3   : > { %v3102_v35 = vpop.f32.mrf.mxu0 }
 0x3d4   : > { %v2319_v50 = vadd.f32 %v3101_v0, %v2270_v7 }
 0x3d5   : > { %v3103_v36 = vpop.f32.mrf.mxu0 }
 0x3d6   : > { %v3104_v16 = vadd.f32 %v3103_v36, %v3102_v35 }
 0x3d8   : > { %v2322_v26 = vadd.f32 %v3104_v16, %v2273_v21 }
 0x3db   : > { %v3127_v52 = vpop.f32.mrf.mxu1 }
 0x3dd   : > { %v3128_v53 = vpop.f32.mrf.mxu1 }
 0x3de   : > { %v3129_v6 = vadd.f32 %v3128_v53, %v3127_v52 }
 0x3df   : > { %v3130_v54 = vpop.f32.mrf.mxu1 }
 0x3e0   : > { %v2368_v29 = vadd.f32 %v3129_v6, %v2319_v50 }
 0x3e1   : > { %v3105_v30 = vpop.f32.mrf.mxu0  ;;  %v3131_v59 = vpop.f32.mrf.mxu1 }
 0x3e2   : > { %v3132_v27 = vadd.f32 %v3131_v59, %v3130_v54 }
 0x3e3   : > { %v3106_v9 = vpop.f32.mrf.mxu0  ;;  %v3133_v49 = vpop.f32.mrf.mxu1 }
 0x3e4   : > { %v3107_v63 = vadd.f32 %v3106_v9, %v3105_v30  ;;  %v2371_v33 = vadd.f32 %v3132_v27, %v2322_v26 }
 0x3e5   : > { %v3108_v56 = vpop.f32.mrf.mxu0  ;;  %v3134_v1 = vpop.f32.mrf.mxu1 }
 0x3e6   : > { %v2327_v11 = vadd.f32 %v3107_v63, %v2278_v61  ;;  %v3135_v24 = vadd.f32 %v3134_v1, %v3133_v49 }
 0x3e7   : > { %v3109_v22 = vpop.f32.mrf.mxu0  ;;  %v3136_v60 = vpop.f32.mrf.mxu1 }
 0x3e8   : > { %v3110_v13 = vadd.f32 %v3109_v22, %v3108_v56  ;;  %v2376_v17 = vadd.f32 %v3135_v24, %v2327_v11 }
 0x3e9   : > { %v3137_v5 = vpop.f32.mrf.mxu1 }
 0x3ea   : > { %v2330_v20 = vadd.f32 %v3110_v13, %v2281_v15  ;;  %v3138_v23 = vadd.f32 %v3137_v5, %v3136_v60 }
 0x3ec   : > { %v2379_v43 = vadd.f32 %v3138_v23, %v2330_v20 }
 0x3ef   : > { %v3331_v18 = vpop.f32.mrf.mxu0 }
 0x3f0   : > { %v2425_v28 = vadd.f32 %v3331_v18, %v2376_v17 }
 0x3f1   : > { %v2416_v39 = vpop.f32.mrf.mxu0 }
 0x3f2   : > { %v2433_v42 = vmax.f32 %v2425_v28, 0.0  ;;  %v2417_v37 = vadd.f32 %v2416_v39, %v2368_v29 }
 0x3f3   : > { %v3332_v41 = vpop.f32.mrf.mxu0 }
 0x3f4   : > { %v2459_v48 = vadd.f32 %v2455_v25, %v2433_v42  ;;  %v2431_v12 = vmax.f32 %v2417_v37, 0.0  ;;  %v2428_v45 = vadd.f32 %v3332_v41, %v2379_v43 }
 0x3f5   : > { %v2419_v51 = vpop.f32.mrf.mxu0 }
 0x3f6   : > { %v2457_v4 = vadd.f32 %v2453_v44, %v2431_v12  ;;  %v2434_v31 = vmax.f32 %v2428_v45, 0.0  ;;  %v2420_v40 = vadd.f32 %v2419_v51, %v2371_v33  ;;  %2464 = sbr.rel (%p2891_p10) target bundleno = 1021 (0x3fd), region = 88 }
 0x3f8   : > { %v2460_v35 = vadd.f32 %v2456_v47, %v2434_v31  ;;  %v2432_v52 = vmax.f32 %v2420_v40, 0.0 }
 0x3fa   : > { %v2458_v53 = vadd.f32 %v2454_v34, %v2432_v52 }
 0x3fb   : > { %2465 = vst [vmem:[#allocation3] sm:$0xff] %v2457_v4  ;;  %2467 = vst [vmem:[#allocation3 + $0x10] sm:$0xff] %v2459_v48 }
 0x3fc   : > { %2466 = vst [vmem:[#allocation3 + $0x8] sm:$0xff] %v2458_v53  ;;  %2468 = vst [vmem:[#allocation3 + $0x18] sm:$0xff] %v2460_v35 }
 0x3fd PF: > { %v2469_v36 = vadd.f32 %v2458_v53, %v2457_v4  ;;  %v2478_v54 = vmul.f32 %v2457_v4, %v2457_v4  ;;  %v2479_v30 = vmul.f32 %v2458_v53, %v2458_v53  ;;  %v2480_v59 = vmul.f32 %v2459_v48, %v2459_v48  ;;  %p2892_p11 = scmp.ne.s32.totalorder %s3923_s11, 5 }
 0x3fe   : > { %v2481_v49 = vmul.f32 %v2460_v35, %v2460_v35 }
 0x3ff   : > { %v2470_v9 = vadd.f32 %v2469_v36, %v2459_v48  ;;  %v2482_v55 = vadd.f32 %v2479_v30, %v2478_v54 }
 0x401   : > { %v2471_v38 = vadd.f32 %v2470_v9, %v2460_v35  ;;  %v2483_v56 = vadd.f32 %v2482_v55, %v2480_v59 }
 0x403   : > { %v2472_v1 = vrot.slane %v2471_v38, 4  ;;  %v2484_v57 = vadd.f32 %v2483_v56, %v2481_v49 }
 0x405   : > { %v2473_v58 = vadd.f32 %v2472_v1, %v2471_v38  ;;  %v2485_v63 = vrot.slane %v2484_v57, 4 }
 0x407   : > { %v2474_v22 = vrot.slane %v2473_v58, 2  ;;  %v2486_v60 = vadd.f32 %v2485_v63, %v2484_v57 }
 0x409   : > { %v2475_v61 = vadd.f32 %v2474_v22, %v2473_v58  ;;  %v2487_v62 = vrot.slane %v2486_v60, 2 }
 0x40b   : > { %v2476_v3 = vrot.slane %v2475_v61, 1  ;;  %v2488_v0 = vadd.f32 %v2487_v62, %v2486_v60 }
 0x40d   : > { %v2477_v7 = vadd.f32 %v2476_v3, %v2475_v61  ;;  %v2489_v10 = vrot.slane %v2488_v0, 1 }
 0x40f   : > { %v2490_v8 = vadd.f32 %v2489_v10, %v2488_v0  ;;  %v2491_v11 = vmul.f32 0.03125, %v2477_v7 }
 0x411   : > { %v2492_v24 = vmul.f32 0.03125, %v2490_v8  ;;  %v2493_v13 = vmul.f32 %v2491_v11, %v2491_v11  ;;  %v2495_v15 = vsub.f32 %v2457_v4, %v2491_v11  ;;  %v2496_v50 = vsub.f32 %v2458_v53, %v2491_v11 }
 0x412   : > { %v2497_v6 = vsub.f32 %v2459_v48, %v2491_v11  ;;  %v2498_v16 = vsub.f32 %v2460_v35, %v2491_v11 }
 0x413   : > { %v2494_v5 = vsub.f32 %v2492_v24, %v2493_v13 }
 0x415   : > { %v2499_v14 = vadd.f32 1e-05, %v2494_v5 }
 0x417   : > { %3574 = vrsqrt.f32 %v2499_v14 }
 0x424   : > { %v3575_v19 = vpop.eup %3574  ;;  %2512 = sbr.rel (%p2892_p11) target bundleno = 1463 (0x5b7), region = 92 }
 0x425   : > { %v2501_v21 = vmul.f32 %v3575_v19, %v2495_v15  ;;  %v2502_v20 = vmul.f32 %v3575_v19, %v2496_v50  ;;  %v2503_v23 = vmul.f32 %v3575_v19, %v2497_v6  ;;  %v2504_v17 = vmul.f32 %v3575_v19, %v2498_v16 }
 0x427   : > { %2505 = vst [vmem:[#allocation2 + $0x10] sm:$0xff] %v2501_v21  ;;  %2506 = vst [vmem:[#allocation2 + $0x8] sm:$0xff] %v2502_v20 }
 0x428   : > { %2507 = vst [vmem:[#allocation2] sm:$0xff] %v2503_v23  ;;  %2508 = vst [vmem:[#allocation2 + $0x18] sm:$0xff] %v2504_v17 }
 0x429   : > { %v2603_v18 = vld [vmem:[#allocation13 + $0x78] sm:$0xff]  ;;  %v3854_v25 = vmov 0.0   ;;  %vm3855_vm9 = vmmov 0   ;;  %v2602_v2 = vld [vmem:[#allocation13 + $0x70] sm:$0xff]  ;;  %v2601_v26 = vld [vmem:[#allocation13 + $0x68] sm:$0xff]  ;;  %vm2514_vm10 = vcmask 261120  }
 0x42a   : > { %3333 = vmatprep.subr.mxu0 %v3854_v25  ;;  %3341 = vmatprep.mubr.msk.f32.mxu0 %vm3855_vm9, %v3854_v25  ;;  %v2513_v27 = vld [vmem:[#allocation12] sm:$0x3]  ;;  %v2600_v28 = vld [vmem:[#allocation13 + $0x60] sm:$0xff]  ;;  %v2598_v32 = vld [vmem:[#allocation13 + $0x50] sm:$0xff] }
 0x42b   : > { %3334 = vmatpush3.msra.mxu0 %v2504_v17  ;;  %3344 = vmatprep.subr.mxu1 %v3854_v25  ;;  %v2599_v29 = vld [vmem:[#allocation13 + $0x58] sm:$0xff]  ;;  %v2597_v39 = vld [vmem:[#allocation13 + $0x48] sm:$0xff]  ;;  %v2596_v42 = vld [vmem:[#allocation13 + $0x40] sm:$0xff] }
 0x42c   : > { %3335 = vmatprep.subr.mxu0 %v3854_v25  ;;  %3345 = vmatpush3.msra.mxu1 %v2603_v18  ;;  %v2595_v37 = vld [vmem:[#allocation13 + $0x38] sm:$0xff]  ;;  %v2594_v44 = vld [vmem:[#allocation13 + $0x30] sm:$0xff]  ;;  %v2593_v43 = vld [vmem:[#allocation13 + $0x28] sm:$0xff] }
 0x42d   : > { %3336 = vmatpush3.msra.mxu0 %v2503_v23  ;;  %3346 = vmatprep.subr.mxu1 %v3854_v25  ;;  %v2592_v41 = vld [vmem:[#allocation13 + $0x20] sm:$0xff]  ;;  %v2591_v47 = vld [vmem:[#allocation13 + $0x18] sm:$0xff]  ;;  %v2590_v46 = vld [vmem:[#allocation13 + $0x10] sm:$0xff] }
 0x42e   : > { %3337 = vmatprep.subr.mxu0 %v3854_v25  ;;  %3347 = vmatpush3.msra.mxu1 %v2602_v2  ;;  %v2589_v48 = vld [vmem:[#allocation13 + $0x8] sm:$0xff]  ;;  %v2588_v12 = vld [vmem:[#allocation13] sm:$0xff] }
 0x42f   : > { %3338 = vmatpush3.msra.mxu0 %v2502_v20  ;;  %3348 = vmatprep.subr.mxu1 %v3854_v25  ;;  %v2894_v51 = vld [vmem:[#allocation15] ss:$0 sm:$0xff] }
 0x430   : > { %3339 = vmatprep.subr.mxu0 %v3854_v25  ;;  %3349 = vmatpush3.msra.mxu1 %v2601_v26 }
 0x431   : > { %3340 = vmatpush3.msra.mxu0 %v2501_v21  ;;  %3350 = vmatprep.subr.mxu1 %v3854_v25 }
 0x432   : > { %3342 = vmatmul.mubr.msk.f32.vlgmr.msra.gmra.mxu0 %vm2514_vm10, %v2513_v27  ;;  %3351 = vmatpush3.msra.mxu1 %v2600_v28 }
 0x433   : > { %3352 = vmatprep.subr.mxu1 %v3854_v25  ;;  %3376 = vmatprep.mubr.msk.f32.mxu1 %vm3855_vm9, %v3854_v25 }
 0x434   : > { %3353 = vmatpush3.msra.mxu1 %v2599_v29 }
 0x435   : > { %3354 = vmatprep.subr.mxu1 %v3854_v25 }
 0x436   : > { %3355 = vmatpush3.msra.mxu1 %v2598_v32 }
 0x437   : > { %3356 = vmatprep.subr.mxu1 %v3854_v25 }
 0x438   : > { %3357 = vmatpush3.msra.mxu1 %v2597_v39 }
 0x439   : > { %3358 = vmatprep.subr.mxu1 %v3854_v25 }
 0x43a   : > { %3359 = vmatpush3.msra.mxu1 %v2596_v42 }
 0x43b   : > { %3360 = vmatprep.subr.mxu1 %v3854_v25 }
 0x43c   : > { %3361 = vmatpush3.msra.mxu1 %v2595_v37 }
 0x43d   : > { %3362 = vmatprep.subr.mxu1 %v3854_v25 }
 0x43e   : > { %3363 = vmatpush3.msra.mxu1 %v2594_v44 }
 0x43f   : > { %3364 = vmatprep.subr.mxu1 %v3854_v25 }
 0x440   : > { %3365 = vmatpush3.msra.mxu1 %v2593_v43 }
 0x441   : > { %3366 = vmatprep.subr.mxu1 %v3854_v25 }
 0x442   : > { %3367 = vmatpush3.msra.mxu1 %v2592_v41 }
 0x443   : > { %3368 = vmatprep.subr.mxu1 %v3854_v25 }
 0x444   : > { %3369 = vmatpush3.msra.mxu1 %v2591_v47 }
 0x445   : > { %3370 = vmatprep.subr.mxu1 %v3854_v25 }
 0x446   : > { %3371 = vmatpush3.msra.mxu1 %v2590_v46 }
 0x447   : > { %3372 = vmatprep.subr.mxu1 %v3854_v25 }
 0x448   : > { %3373 = vmatpush3.msra.mxu1 %v2589_v48 }
 0x449   : > { %3374 = vmatprep.subr.mxu1 %v3854_v25 }
 0x44a   : > { %3375 = vmatpush3.msra.mxu1 %v2588_v12 }
 0x4f2   : > { %v2584_v45 = vpop.f32.mrf.mxu0 }
 0x4f3   : > { %3377 = vmatmul.mubr.f32.vlgmr.msra.gmra.mxu1 %v2584_v45 }
 0x4f4   : > { %v3343_v33 = vpop.f32.mrf.mxu0 }
 0x5b3   : > { %v2677_v4 = vpop.f32.mrf.mxu1 }
 0x5b4   : > { %v2678_v31 = vadd.f32 %v2894_v51, %v2677_v4 }
 0x5b5   : > { %v3378_v40 = vpop.f32.mrf.mxu1 }
 0x5b6   : > { %2681 = vst [vmem:[#allocation16] sm:$0x3] %v2678_v31 }
 0x5b7 PF: > { %p3448_p12 = scmp.eq.s32.totalorder %s3923_s11, 5  ;;  %s3856_s26 = smov [#allocation16]  }
 0x5b8   : > { %s2689_s17 = sshll.u32 %s3856_s26, 4  ;;  %s2690_s17 = int_to_ptr.vmem [resolvable:$true] %s2689_s17 }
 0x5b9   : > { %s3760_s25 = scalar_lea.vmem %s2690_s17, 32  ;;  %p3767_p6 = scmp.lt.s32.totalorder %s2690_s17, %s2690_s17 }
 0x5ba   : > { %p3761_p13 = scmp.ne.s32.totalorder %s2690_s17, %s3760_s25  ;;  %p3768_p0 = scmp.lt.s32.totalorder %s3760_s25, %s3760_s25 }
 0x5bc   : > { %p3762_p7 = pnand %p3761_p13, %p3448_p12  ;;  %p3769_p2 = por %p3768_p0, %p3767_p6 }
 0x5be   : > { %p3763_p8 = pneg %p3762_p7 }
 0x5c0   : > { %p3770_p5 = pnand %p3769_p2, %p3763_p8 }
 0x5c2   : > { %3773 = shalt.err (!%p3770_p5)
}
 0x5c3   : > { %3409 = dma.vmem_to_hbm [thread:$0]  (%p3448_p12), %s2690_s17, 32, %s4592_s8, [#allocation6]  }
 0x5c4   : > { %3821 = dma.done.wait (%p3448_p12), [#allocation6], 32  }
 0x5c5   : > { %3823 = vsyncadd (%p3448_p12), [#allocation6], 4294967264 }
 0x5c6 PF: > { %p22_p1 = scmp.ge.s32.totalorder %s3999_s18, 8   ;;  %s4613_s27 = smov %s3830_s28 }
 0x5c7   : > { %s4614_s28 = smov %s3834_s29  ;;  %s4615_s29 = smov %s4011_s13 }
 0x5c8   : > { %s4616_s30 = smov %s3999_s18  ;;  %24 = sbr.rel (!%p22_p1) target bundleno = 7 (0x7), region = 133 }
 0x5cd   :  { %2702 = vsyncpa [#allocation5], 1 }
 0x5ce   :  { %2704 = vsyncpa [#allocation5 + $0x1], 1 }
 0x5cf   :  { %2705 = vsyncpa [#allocation8], 1 }
 0x5d0   :  { %2706 = vsyncpa [#allocation11], 1 }
 0x5d1   :  { %2708 = vsyncpa [#allocation11 + $0x1], 1 }
 0x5d2   :  { %2709 = vsyncpa [#allocation14], 1 }
 0x5d3   :  { %2710 = vsyncpa [#allocation6], 1 }
 0x5d4   :  { %2712 = vsyncpa [#allocation6 + $0x1], 1 }

</bundles_post_ra>
